<compile_context>
chip_gen: v6e
topology: v6e:2x2x1
jax: 0.10.0
libtpu: 0.0.40
codegen_flags: <defaults>
</compile_context>

<pallas_src>
import jax
import jax.numpy as jnp
import numpy as np
from jax.experimental import pallas as pl
from jax.experimental.pallas import tpu as pltpu


def _cluster_net_kernel(x_ref, w0_ref, b0_ref, w1_ref, b1_ref,
                        w2_ref, b2_ref, w3_ref, b3_ref, wr_ref, br_ref, o_ref):
    # TODO(synk): torch runs the cluster-mix stage in float64 (x.double());
    # TPU has no f64, so it is computed in float32 here.
    x = x_ref[...]                                                    # (TG, 8*I)
    t = jnp.maximum(
        jnp.dot(x, w0_ref[...], preferred_element_type=jnp.float32) + b0_ref[...], 0.0)
    h = jnp.maximum(
        jnp.dot(t, w1_ref[...], preferred_element_type=jnp.float32) + b1_ref[...], 0.0)
    h = jnp.maximum(
        jnp.dot(h, w2_ref[...], preferred_element_type=jnp.float32) + b2_ref[...], 0.0)
    h = jnp.maximum(
        jnp.dot(h, w3_ref[...], preferred_element_type=jnp.float32) + b3_ref[...], 0.0)
    # Dropout layers are identity in eval mode; final Linear and regressor are
    # pre-fused in the wrapper.  Output lane width (=pack) is a masked store but
    # the write volume is negligible.
    o_ref[...] = jnp.dot(h, wr_ref[...], preferred_element_type=jnp.float32) + br_ref[...]


def cluster_specific_net(params, x, soft_label, *, pack=8, tile_packed=256):
    n, in_dim = x.shape
    c_dim, _, h_dim = params["cw"].shape
    ch = c_dim * h_dim

    def cdiv(a, b):
        return -(-a // b)

    def rup(a, b):
        return cdiv(a, b) * b

    # ---- algebraic folding (tiny, one-time, XLA-side) ----
    scale = jnp.sum(soft_label, axis=0)                               # (C,)  sum_a sl[a,c]
    cw_s = params["cw"] * scale[:, None, None]                        # scale BEFORE relu
    cb_s = params["cb"] * scale[:, None]
    w0 = jnp.transpose(cw_s, (1, 0, 2)).reshape(in_dim, ch)           # (I, C*H)
    b0 = cb_s.reshape(1, ch)                                          # (1, C*H)
    sw1 = jnp.tile(params["w1"], (c_dim, 1)) / c_dim                  # (C*H, H)  mean folded
    wr_f = params["w4"] @ params["wr"]                                # (H, 1)
    br_f = params["b4"] @ params["wr"] + params["br"]                 # (1, 1)

    # ---- pack `pack` batch rows into lanes via block-diagonal weights ----
    eye = jnp.eye(pack, dtype=jnp.float32)
    bd = lambda w: jnp.kron(eye, w)                                   # block-diagonal
    tl = lambda b: jnp.tile(b, (1, pack))                             # bias tiled along lanes
    w0_bd, b0_bd = bd(w0), tl(b0)                                     # (8I, 8CH), (1, 8CH)
    w1_bd, b1_bd = bd(sw1), tl(params["b1"])                          # (8CH, 8H)
    w2_bd, b2_bd = bd(params["w2"]), tl(params["b2"])                 # (8H, 16H)
    w3_bd, b3_bd = bd(params["w3"]), tl(params["b3"])                 # (16H, 8H)
    wr_bd, br_bd = bd(wr_f), tl(br_f)                                 # (8H, 8), (1, 8)

    # ---- batch tiling: big tiles, but keep >=~8 grid steps for large N so the
    # "parallel" axis shards across TensorCores (v7x) and DMA double-buffers ----
    g_need = cdiv(n, pack)
    tile_g = min(tile_packed, rup(cdiv(g_need, 8), 8))                # multiple of 8 sublanes
    g_pad = rup(g_need, tile_g)
    n_pad = g_pad * pack
    if n_pad != n:
        x = jnp.pad(x, ((0, n_pad - n), (0, 0)))
    x_packed = x.reshape(g_pad, pack * in_dim)                        # lane-dense x
    grid = (g_pad // tile_g,)

    resident = lambda a: pl.BlockSpec(a.shape, lambda i: (0, 0))      # stays in VMEM
    out = pl.pallas_call(
        _cluster_net_kernel,
        out_shape=jax.ShapeDtypeStruct((g_pad, pack), jnp.float32),
        grid=grid,
        in_specs=[
            pl.BlockSpec((tile_g, pack * in_dim), lambda i: (i, 0)),  # x (pipelined)
            resident(w0_bd), resident(b0_bd),
            resident(w1_bd), resident(b1_bd),
            resident(w2_bd), resident(b2_bd),
            resident(w3_bd), resident(b3_bd),
            resident(wr_bd), resident(br_bd),
        ],
        out_specs=pl.BlockSpec((tile_g, pack), lambda i: (i, 0)),
        compiler_params=pltpu.CompilerParams(
            dimension_semantics=("parallel",),          # megacore sharding on v7x
            vmem_limit_bytes=32 * 1024 * 1024),
    )(x_packed, w0_bd, b0_bd, w1_bd, b1_bd, w2_bd, b2_bd, w3_bd, b3_bd, wr_bd, br_bd)
    return out.reshape(n_pad, 1)[:n]


def init_params(key, num_clusters, input_size, hidden_size):
    ks = jax.random.split(key, 12)

    def lin(kw, kb, fin, fout):
        bound = 1.0 / np.sqrt(fin)
        w = jax.random.uniform(kw, (fin, fout), jnp.float32, -bound, bound)
        b = jax.random.uniform(kb, (1, fout), jnp.float32, -bound, bound)
        return w, b

    cw = jax.random.normal(ks[0], (num_clusters, input_size, hidden_size), jnp.float32)
    cb = jax.random.normal(ks[1], (num_clusters, hidden_size), jnp.float32)
    w1, b1 = lin(ks[2], ks[3], hidden_size, hidden_size)
    w2, b2 = lin(ks[4], ks[5], hidden_size, 2 * hidden_size)
    w3, b3 = lin(ks[6], ks[7], 2 * hidden_size, hidden_size)
    w4, b4 = lin(ks[8], ks[9], hidden_size, hidden_size)
    wr, br = lin(ks[10], ks[11], hidden_size, 1)
    return dict(cw=cw, cb=cb, w1=w1, b1=b1, w2=w2, b2=b2,
                w3=w3, b3=b3, w4=w4, b4=b4, wr=wr, br=br)


def ref_forward(params, x, soft_label):
    # Pure-JAX transcription of the torch forward (f32, eval-mode dropout).
    w = jnp.sum(soft_label[:, :, None, None] * params["cw"][None], axis=0)   # (C, I, H)
    b = jnp.sum(soft_label[:, :, None] * params["cb"][None], axis=0)         # (C, H)
    t = jax.nn.relu(jnp.einsum("ni,cih->nch", x, w) + b[None])
    m = jnp.mean(t, axis=1)                                                   # (N, H)
    h = jax.nn.relu(m @ params["w1"] + params["b1"])
    h = jax.nn.relu(h @ params["w2"] + params["b2"])
    h = jax.nn.relu(h @ params["w3"] + params["b3"])
    h = h @ params["w4"] + params["b4"]
    return h @ params["wr"] + params["br"]


if __name__ == "__main__":
    num_clusters, input_size, hidden_size, output_size = 4, 16, 32, 1
    N, A = 2, 1   # A = leading dim of soft_label (summed over in the forward)

    key = jax.random.PRNGKey(0)
    kp, kx, ks = jax.random.split(key, 3)
    params = init_params(kp, num_clusters, input_size, hidden_size)
    x = jax.random.normal(kx, (N, input_size), jnp.float32)
    soft_label = jax.nn.softmax(
        jax.random.normal(ks, (A, num_clusters), jnp.float32), axis=-1)

    out = jax.block_until_ready(cluster_specific_net(params, x, soft_label))
    ref = jax.block_until_ready(ref_forward(params, x, soft_label))
    assert out.shape == (N, 1)
    np.testing.assert_allclose(np.asarray(out), np.asarray(ref), rtol=1e-4, atol=1e-4)
    print("KERNEL_OK")
</pallas_src>

<mosaic_0001>
module attributes {stable_mosaic.version = 11 : i64} {
  func.func @_cluster_net_kernel(%arg0: i32, %arg1: memref<8x128xf32, #tpu.memory_space<vmem>>, %arg2: memref<128x1024xf32, #tpu.memory_space<vmem>>, %arg3: memref<1x1024xf32, #tpu.memory_space<vmem>>, %arg4: memref<1024x256xf32, #tpu.memory_space<vmem>>, %arg5: memref<1x256xf32, #tpu.memory_space<vmem>>, %arg6: memref<256x512xf32, #tpu.memory_space<vmem>>, %arg7: memref<1x512xf32, #tpu.memory_space<vmem>>, %arg8: memref<512x256xf32, #tpu.memory_space<vmem>>, %arg9: memref<1x256xf32, #tpu.memory_space<vmem>>, %arg10: memref<256x8xf32, #tpu.memory_space<vmem>>, %arg11: memref<1x8xf32, #tpu.memory_space<vmem>>, %arg12: memref<8x8xf32, #tpu.memory_space<vmem>>) attributes {dimension_semantics = [#tpu.dimension_semantics<parallel>], iteration_bounds = array<i64: 1>, scalar_prefetch = 0 : i64, scratch_operands = 0 : i64, tpu.core_type = #tpu.core_type<tc>, window_params = [{transform_indices = @transform_0, window_bounds = array<i64: 8, 128>}, {pipeline_mode = #tpu.pipeline_mode<synchronous>, transform_indices = @transform_1, window_bounds = array<i64: 128, 1024>}, {pipeline_mode = #tpu.pipeline_mode<synchronous>, transform_indices = @transform_2, window_bounds = array<i64: 1, 1024>}, {pipeline_mode = #tpu.pipeline_mode<synchronous>, transform_indices = @transform_3, window_bounds = array<i64: 1024, 256>}, {pipeline_mode = #tpu.pipeline_mode<synchronous>, transform_indices = @transform_4, window_bounds = array<i64: 1, 256>}, {pipeline_mode = #tpu.pipeline_mode<synchronous>, transform_indices = @transform_5, window_bounds = array<i64: 256, 512>}, {pipeline_mode = #tpu.pipeline_mode<synchronous>, transform_indices = @transform_6, window_bounds = array<i64: 1, 512>}, {pipeline_mode = #tpu.pipeline_mode<synchronous>, transform_indices = @transform_7, window_bounds = array<i64: 512, 256>}, {pipeline_mode = #tpu.pipeline_mode<synchronous>, transform_indices = @transform_8, window_bounds = array<i64: 1, 256>}, {pipeline_mode = #tpu.pipeline_mode<synchronous>, transform_indices = @transform_9, window_bounds = array<i64: 256, 8>}, {pipeline_mode = #tpu.pipeline_mode<synchronous>, transform_indices = @transform_10, window_bounds = array<i64: 1, 8>}, {transform_indices = @transform_11, window_bounds = array<i64: 8, 8>}]} {
    %c0 = arith.constant 0 : index
    %c0_0 = arith.constant 0 : index
    %0 = vector.load %arg1[%c0, %c0_0] : memref<8x128xf32, #tpu.memory_space<vmem>>, vector<8x128xf32>
    %c0_1 = arith.constant 0 : index
    %c0_2 = arith.constant 0 : index
    %1 = vector.load %arg2[%c0_1, %c0_2] : memref<128x1024xf32, #tpu.memory_space<vmem>>, vector<128x1024xf32>
    %cst = arith.constant dense<0.000000e+00> : vector<8x1024xf32>
    %2 = tpu.matmul %0, %1, %cst {dimension_numbers = #tpu.dot_dimension_numbers<[1], [0], [0], [1], [0, 0, 1, 1], [], []>} : vector<8x128xf32>, vector<128x1024xf32>, vector<8x1024xf32> -> vector<8x1024xf32>
    %c0_3 = arith.constant 0 : index
    %c0_4 = arith.constant 0 : index
    %3 = vector.load %arg3[%c0_3, %c0_4] : memref<1x1024xf32, #tpu.memory_space<vmem>>, vector<1x1024xf32>
    %4 = vector.broadcast %3 : vector<1x1024xf32> to vector<8x1024xf32>
    %5 = arith.addf %2, %4 : vector<8x1024xf32>
    %cst_5 = arith.constant 0.000000e+00 : f32
    %6 = vector.broadcast %cst_5 : f32 to vector<8x1024xf32>
    %7 = arith.maximumf %5, %6 : vector<8x1024xf32>
    %c0_6 = arith.constant 0 : index
    %c0_7 = arith.constant 0 : index
    %8 = vector.load %arg4[%c0_6, %c0_7] : memref<1024x256xf32, #tpu.memory_space<vmem>>, vector<1024x256xf32>
    %cst_8 = arith.constant dense<0.000000e+00> : vector<8x256xf32>
    %9 = tpu.matmul %7, %8, %cst_8 {dimension_numbers = #tpu.dot_dimension_numbers<[1], [0], [0], [1], [0, 0, 1, 1], [], []>} : vector<8x1024xf32>, vector<1024x256xf32>, vector<8x256xf32> -> vector<8x256xf32>
    %c0_9 = arith.constant 0 : index
    %c0_10 = arith.constant 0 : index
    %10 = vector.load %arg5[%c0_9, %c0_10] : memref<1x256xf32, #tpu.memory_space<vmem>>, vector<1x256xf32>
    %11 = vector.broadcast %10 : vector<1x256xf32> to vector<8x256xf32>
    %12 = arith.addf %9, %11 : vector<8x256xf32>
    %cst_11 = arith.constant 0.000000e+00 : f32
    %13 = vector.broadcast %cst_11 : f32 to vector<8x256xf32>
    %14 = arith.maximumf %12, %13 : vector<8x256xf32>
    %c0_12 = arith.constant 0 : index
    %c0_13 = arith.constant 0 : index
    %15 = vector.load %arg6[%c0_12, %c0_13] : memref<256x512xf32, #tpu.memory_space<vmem>>, vector<256x512xf32>
    %cst_14 = arith.constant dense<0.000000e+00> : vector<8x512xf32>
    %16 = tpu.matmul %14, %15, %cst_14 {dimension_numbers = #tpu.dot_dimension_numbers<[1], [0], [0], [1], [0, 0, 1, 1], [], []>} : vector<8x256xf32>, vector<256x512xf32>, vector<8x512xf32> -> vector<8x512xf32>
    %c0_15 = arith.constant 0 : index
    %c0_16 = arith.constant 0 : index
    %17 = vector.load %arg7[%c0_15, %c0_16] : memref<1x512xf32, #tpu.memory_space<vmem>>, vector<1x512xf32>
    %18 = vector.broadcast %17 : vector<1x512xf32> to vector<8x512xf32>
    %19 = arith.addf %16, %18 : vector<8x512xf32>
    %cst_17 = arith.constant 0.000000e+00 : f32
    %20 = vector.broadcast %cst_17 : f32 to vector<8x512xf32>
    %21 = arith.maximumf %19, %20 : vector<8x512xf32>
    %c0_18 = arith.constant 0 : index
    %c0_19 = arith.constant 0 : index
    %22 = vector.load %arg8[%c0_18, %c0_19] : memref<512x256xf32, #tpu.memory_space<vmem>>, vector<512x256xf32>
    %cst_20 = arith.constant dense<0.000000e+00> : vector<8x256xf32>
    %23 = tpu.matmul %21, %22, %cst_20 {dimension_numbers = #tpu.dot_dimension_numbers<[1], [0], [0], [1], [0, 0, 1, 1], [], []>} : vector<8x512xf32>, vector<512x256xf32>, vector<8x256xf32> -> vector<8x256xf32>
    %c0_21 = arith.constant 0 : index
    %c0_22 = arith.constant 0 : index
    %24 = vector.load %arg9[%c0_21, %c0_22] : memref<1x256xf32, #tpu.memory_space<vmem>>, vector<1x256xf32>
    %25 = vector.broadcast %24 : vector<1x256xf32> to vector<8x256xf32>
    %26 = arith.addf %23, %25 : vector<8x256xf32>
    %cst_23 = arith.constant 0.000000e+00 : f32
    %27 = vector.broadcast %cst_23 : f32 to vector<8x256xf32>
    %28 = arith.maximumf %26, %27 : vector<8x256xf32>
    %c0_24 = arith.constant 0 : index
    %c0_25 = arith.constant 0 : index
    %29 = vector.load %arg10[%c0_24, %c0_25] : memref<256x8xf32, #tpu.memory_space<vmem>>, vector<256x8xf32>
    %cst_26 = arith.constant dense<0.000000e+00> : vector<8x8xf32>
    %30 = tpu.matmul %28, %29, %cst_26 {dimension_numbers = #tpu.dot_dimension_numbers<[1], [0], [0], [1], [0, 0, 1, 1], [], []>} : vector<8x256xf32>, vector<256x8xf32>, vector<8x8xf32> -> vector<8x8xf32>
    %c0_27 = arith.constant 0 : index
    %c0_28 = arith.constant 0 : index
    %31 = vector.load %arg11[%c0_27, %c0_28] : memref<1x8xf32, #tpu.memory_space<vmem>>, vector<1x8xf32>
    %32 = vector.broadcast %31 : vector<1x8xf32> to vector<8x8xf32>
    %33 = arith.addf %30, %32 : vector<8x8xf32>
    %c0_29 = arith.constant 0 : index
    %c0_30 = arith.constant 0 : index
    %34 = vector.load %arg12[%c0_29, %c0_30] : memref<8x8xf32, #tpu.memory_space<vmem>>, vector<8x8xf32>
    tpu.vector_store %arg12[%c0_29, %c0_30], %33 {strides = array<i32>} : memref<8x8xf32, #tpu.memory_space<vmem>>, vector<8x8xf32>,
    return
  }
  func.func @transform_0(%arg0: i32) -> (i32, i32) {
    %c0_i32 = arith.constant 0 : i32
    %c0_i32_0 = arith.constant 0 : i32
    return %arg0, %c0_i32 : i32, i32
  }
  func.func @transform_1(%arg0: i32) -> (i32, i32) {
    %c0_i32 = arith.constant 0 : i32
    %c0_i32_0 = arith.constant 0 : i32
    %c0_i32_1 = arith.constant 0 : i32
    return %c0_i32, %c0_i32_0 : i32, i32
  }
  func.func @transform_2(%arg0: i32) -> (i32, i32) {
    %c0_i32 = arith.constant 0 : i32
    %c0_i32_0 = arith.constant 0 : i32
    %c0_i32_1 = arith.constant 0 : i32
    return %c0_i32, %c0_i32_0 : i32, i32
  }
  func.func @transform_3(%arg0: i32) -> (i32, i32) {
    %c0_i32 = arith.constant 0 : i32
    %c0_i32_0 = arith.constant 0 : i32
    %c0_i32_1 = arith.constant 0 : i32
    return %c0_i32, %c0_i32_0 : i32, i32
  }
  func.func @transform_4(%arg0: i32) -> (i32, i32) {
    %c0_i32 = arith.constant 0 : i32
    %c0_i32_0 = arith.constant 0 : i32
    %c0_i32_1 = arith.constant 0 : i32
    return %c0_i32, %c0_i32_0 : i32, i32
  }
  func.func @transform_5(%arg0: i32) -> (i32, i32) {
    %c0_i32 = arith.constant 0 : i32
    %c0_i32_0 = arith.constant 0 : i32
    %c0_i32_1 = arith.constant 0 : i32
    return %c0_i32, %c0_i32_0 : i32, i32
  }
  func.func @transform_6(%arg0: i32) -> (i32, i32) {
    %c0_i32 = arith.constant 0 : i32
    %c0_i32_0 = arith.constant 0 : i32
    %c0_i32_1 = arith.constant 0 : i32
    return %c0_i32, %c0_i32_0 : i32, i32
  }
  func.func @transform_7(%arg0: i32) -> (i32, i32) {
    %c0_i32 = arith.constant 0 : i32
    %c0_i32_0 = arith.constant 0 : i32
    %c0_i32_1 = arith.constant 0 : i32
    return %c0_i32, %c0_i32_0 : i32, i32
  }
  func.func @transform_8(%arg0: i32) -> (i32, i32) {
    %c0_i32 = arith.constant 0 : i32
    %c0_i32_0 = arith.constant 0 : i32
    %c0_i32_1 = arith.constant 0 : i32
    return %c0_i32, %c0_i32_0 : i32, i32
  }
  func.func @transform_9(%arg0: i32) -> (i32, i32) {
    %c0_i32 = arith.constant 0 : i32
    %c0_i32_0 = arith.constant 0 : i32
    %c0_i32_1 = arith.constant 0 : i32
    return %c0_i32, %c0_i32_0 : i32, i32
  }
  func.func @transform_10(%arg0: i32) -> (i32, i32) {
    %c0_i32 = arith.constant 0 : i32
    %c0_i32_0 = arith.constant 0 : i32
    %c0_i32_1 = arith.constant 0 : i32
    return %c0_i32, %c0_i32_0 : i32, i32
  }
  func.func @transform_11(%arg0: i32) -> (i32, i32) {
    %c0_i32 = arith.constant 0 : i32
    %c0_i32_0 = arith.constant 0 : i32
    return %arg0, %c0_i32 : i32, i32
  }
}

</mosaic_0001>

<bundles_post_ra>
// kernel: tpu_custom_call.1
= control target key start
LH: loop header
LB: loop body
LE: loop exit
PB: predicated region body
PF: predicated region fallthrough
CT: control target
= control target key end

     0   :  { %16 = vsyncpa [#allocation3], 0  ;;  %s2232_s0 = inlined_call_operand.vmem [shape: f32[8,128], index: 0, kind: input, shape index: {}]   ;;  %s2233_s1 = inlined_call_operand.hbm [shape: f32[128,1024], index: 1, kind: input, shape index: {}]   ;;  %s2234_s2 = inlined_call_operand.vmem [shape: f32[1,1024], index: 2, kind: input, shape index: {}]   ;;  %s2235_s3 = inlined_call_operand.hbm [shape: f32[1024,256], index: 3, kind: input, shape index: {}]   ;;  %s2236_s4 = inlined_call_operand.vmem [shape: f32[1,256], index: 4, kind: input, shape index: {}]   ;;  %s2237_s5 = inlined_call_operand.hbm [shape: f32[256,512], index: 5, kind: input, shape index: {}]   ;;  %s2238_s6 = inlined_call_operand.vmem [shape: f32[1,512], index: 6, kind: input, shape index: {}]   ;;  %s2239_s7 = inlined_call_operand.hbm [shape: f32[512,256], index: 7, kind: input, shape index: {}]   ;;  %s2240_s8 = inlined_call_operand.vmem [shape: f32[1,256], index: 8, kind: input, shape index: {}]   ;;  %s2241_s9 = inlined_call_operand.vmem [shape: f32[256,8], index: 9, kind: input, shape index: {}]   ;;  %s2242_s10 = inlined_call_operand.vmem [shape: f32[1,8], index: 10, kind: input, shape index: {}]   ;;  %s2243_s11 = inlined_call_operand.hbm [shape: f32[8,8], index: 11, kind: output, shape index: {}]  }
   0x1   :  { %17 = vsyncpa [#allocation6], 0 }
   0x2   :  { %18 = vsyncpa [#allocation9], 0 }
   0x3   :  { %19 = vsyncpa [#allocation4], 0  ;;  %s1975_s17 = smov [#allocation5]  }
   0x4   :  { %s41_s18 = sshll.u32 %s1975_s17, 4  ;;  %s42_s18 = int_to_ptr.vmem [resolvable:$true] %s41_s18 }
   0x5   :  { %s1875_s19 = scalar_lea.vmem %s42_s18, 32768  ;;  %p1880_p1 = scmp.lt.s32.totalorder %s42_s18, %s42_s18 }
   0x6   :  { %p1876_p0 = scmp.ne.s32.totalorder %s42_s18, %s1875_s19  ;;  %p1881_p2 = scmp.lt.s32.totalorder %s1875_s19, %s1875_s19 }
   0x8   :  { %p1882_p3 = por %p1881_p2, %p1880_p1 }
   0xa   :  { %p1883_p4 = pnand %p1882_p3, %p1876_p0 }
   0xc   :  { %1886 = shalt.err (!%p1883_p4)
}
   0xd   :  { %s1976_s20 = smov 256   ;;  %s1977_s21 = smov 16  }
   0xe   :  { %47 = dma.hbm_to_vmem [thread:$0]  %s2235_s3, 32768, %s42_s18, [#allocation6], %s1976_s20, %s1976_s20, %s1977_s21  }
   0xf   :  { %s1978_s24 = smov [#allocation2]  }
  0x10   :  { %s27_s25 = sshll.u32 %s1978_s24, 4  ;;  %s28_s25 = int_to_ptr.vmem [resolvable:$true] %s27_s25 }
  0x11   :  { %s1895_s26 = scalar_lea.vmem %s28_s25, 16384  ;;  %p1900_p6 = scmp.lt.s32.totalorder %s28_s25, %s28_s25 }
  0x12   :  { %p1896_p5 = scmp.ne.s32.totalorder %s28_s25, %s1895_s26  ;;  %p1901_p7 = scmp.lt.s32.totalorder %s1895_s26, %s1895_s26 }
  0x14   :  { %p1902_p8 = por %p1901_p7, %p1900_p6 }
  0x16   :  { %p1903_p9 = pnand %p1902_p8, %p1896_p5 }
  0x18   :  { %1906 = shalt.err (!%p1903_p9)
}
  0x19   :  { %s1979_s27 = smov 1024   ;;  %s1980_s28 = smov 64  }
  0x1a   :  { %33 = dma.hbm_to_vmem [thread:$0]  %s2233_s1, 16384, %s28_s25, [#allocation3], %s1979_s27, %s1979_s27, %s1980_s28  }
  0x1b   :  { %s1981_s12 = smov [#allocation7]  }
  0x1c   :  { %s55_s13 = sshll.u32 %s1981_s12, 4  ;;  %s56_s13 = int_to_ptr.vmem [resolvable:$true] %s55_s13 }
  0x1d   :  { %s1915_s3 = scalar_lea.vmem %s56_s13, 16384  ;;  %p1920_p11 = scmp.lt.s32.totalorder %s56_s13, %s56_s13 }
  0x1e   :  { %p1916_p10 = scmp.ne.s32.totalorder %s56_s13, %s1915_s3  ;;  %p1921_p12 = scmp.lt.s32.totalorder %s1915_s3, %s1915_s3 }
  0x20   :  { %p1922_p13 = por %p1921_p12, %p1920_p11 }
  0x22   :  { %p1923_p0 = pnand %p1922_p13, %p1916_p10 }
  0x24   :  { %1926 = shalt.err (!%p1923_p0)
}
  0x25   :  { %s1982_s14 = smov 512   ;;  %s1983_s15 = smov 32  }
  0x26   :  { %61 = dma.hbm_to_vmem [thread:$0]  %s2237_s5, 16384, %s56_s13, [#allocation6], %s1982_s14, %s1982_s14, %s1983_s15  }
  0x27   :  { %s1984_s18 = smov [#allocation8]  }
  0x28   :  { %s69_s19 = sshll.u32 %s1984_s18, 4  ;;  %s70_s19 = int_to_ptr.vmem [resolvable:$true] %s69_s19 }
  0x29   :  { %s1935_s1 = scalar_lea.vmem %s70_s19, 16384  ;;  %p1940_p2 = scmp.lt.s32.totalorder %s70_s19, %s70_s19 }
  0x2a   :  { %p1936_p1 = scmp.ne.s32.totalorder %s70_s19, %s1935_s1  ;;  %p1941_p3 = scmp.lt.s32.totalorder %s1935_s1, %s1935_s1 }
  0x2c   :  { %p1942_p4 = por %p1941_p3, %p1940_p2 }
  0x2e   :  { %p1943_p5 = pnand %p1942_p4, %p1936_p1 }
  0x30   :  { %1946 = shalt.err (!%p1943_p5)
}
  0x31   :  { %75 = dma.hbm_to_vmem [thread:$0]  %s2239_s7, 16384, %s70_s19, [#allocation9], %s1976_s20, %s1976_s20, %s1977_s21  }
  0x32   :  { %1967 = dma.done.wait [#allocation3], 16384  }
  0x33   :  { %1968 = vsyncadd [#allocation3], 4294950912 }
  0x34   :  { %1969 = dma.done.wait [#allocation6], 49152  }
  0x35   :  { %1970 = vsyncadd [#allocation6], 4294918144 }
  0x36   :  { %1971 = dma.done.wait [#allocation9], 16384  }
  0x37   :  { %1972 = vsyncadd [#allocation9], 4294950912  ;;  %v1985_v0 = vmov 0.0   ;;  %v216_v1 = vld [vmem:[#allocation2 + $0x3c8] sm:$0xff]  ;;  %v218_v2 = vld [vmem:[#allocation2 + $0x3d8] sm:$0xff]  ;;  %vm1800_vm0 = vcmask 64512  }
  0x38   :  { %329 = vmatprep.mubr.f32.mxu0 %v1985_v0  ;;  %400 = vmatprep.mubr.f32.mxu1 %v1985_v0  ;;  %v215_v3 = vld [vmem:[#allocation2 + $0x3c0] sm:$0xff]  ;;  %v217_v4 = vld [vmem:[#allocation2 + $0x3d0] sm:$0xff]  ;;  %v208_v5 = vld [vmem:[#allocation2 + $0x388] sm:$0xff] }
  0x39   :  { %265 = vmatprep.subr.mxu0 %v216_v1  ;;  %336 = vmatprep.subr.mxu1 %v218_v2  ;;  %v210_v6 = vld [vmem:[#allocation2 + $0x398] sm:$0xff]  ;;  %v207_v7 = vld [vmem:[#allocation2 + $0x380] sm:$0xff]  ;;  %v209_v8 = vld [vmem:[#allocation2 + $0x390] sm:$0xff] }
  0x3a   :  { %266 = vmatpush1.msra.mxu0 %v215_v3  ;;  %337 = vmatpush1.msra.mxu1 %v217_v4  ;;  %v200_v9 = vld [vmem:[#allocation2 + $0x348] sm:$0xff]  ;;  %v202_v10 = vld [vmem:[#allocation2 + $0x358] sm:$0xff]  ;;  %v199_v11 = vld [vmem:[#allocation2 + $0x340] sm:$0xff] }
  0x3b   :  { %267 = vmatprep.subr.mxu0 %v208_v5  ;;  %338 = vmatprep.subr.mxu1 %v210_v6  ;;  %v201_v12 = vld [vmem:[#allocation2 + $0x350] sm:$0xff]  ;;  %v192_v13 = vld [vmem:[#allocation2 + $0x308] sm:$0xff]  ;;  %v194_v14 = vld [vmem:[#allocation2 + $0x318] sm:$0xff] }
  0x3c   :  { %268 = vmatpush1.msra.mxu0 %v207_v7  ;;  %339 = vmatpush1.msra.mxu1 %v209_v8  ;;  %v191_v15 = vld [vmem:[#allocation2 + $0x300] sm:$0xff]  ;;  %v193_v16 = vld [vmem:[#allocation2 + $0x310] sm:$0xff]  ;;  %v184_v17 = vld [vmem:[#allocation2 + $0x2c8] sm:$0xff] }
  0x3d   :  { %269 = vmatprep.subr.mxu0 %v200_v9  ;;  %340 = vmatprep.subr.mxu1 %v202_v10  ;;  %v186_v18 = vld [vmem:[#allocation2 + $0x2d8] sm:$0xff]  ;;  %v183_v19 = vld [vmem:[#allocation2 + $0x2c0] sm:$0xff]  ;;  %v185_v20 = vld [vmem:[#allocation2 + $0x2d0] sm:$0xff] }
  0x3e   :  { %270 = vmatpush1.msra.mxu0 %v199_v11  ;;  %341 = vmatpush1.msra.mxu1 %v201_v12  ;;  %v176_v21 = vld [vmem:[#allocation2 + $0x288] sm:$0xff]  ;;  %v178_v22 = vld [vmem:[#allocation2 + $0x298] sm:$0xff]  ;;  %v175_v23 = vld [vmem:[#allocation2 + $0x280] sm:$0xff] }
  0x3f   :  { %271 = vmatprep.subr.mxu0 %v192_v13  ;;  %342 = vmatprep.subr.mxu1 %v194_v14  ;;  %v177_v24 = vld [vmem:[#allocation2 + $0x290] sm:$0xff]  ;;  %v168_v25 = vld [vmem:[#allocation2 + $0x248] sm:$0xff]  ;;  %v170_v26 = vld [vmem:[#allocation2 + $0x258] sm:$0xff] }
  0x40   :  { %272 = vmatpush1.msra.mxu0 %v191_v15  ;;  %343 = vmatpush1.msra.mxu1 %v193_v16  ;;  %v167_v27 = vld [vmem:[#allocation2 + $0x240] sm:$0xff]  ;;  %v169_v28 = vld [vmem:[#allocation2 + $0x250] sm:$0xff]  ;;  %v160_v29 = vld [vmem:[#allocation2 + $0x208] sm:$0xff] }
  0x41   :  { %273 = vmatprep.subr.mxu0 %v184_v17  ;;  %344 = vmatprep.subr.mxu1 %v186_v18  ;;  %v162_v30 = vld [vmem:[#allocation2 + $0x218] sm:$0xff]  ;;  %v159_v31 = vld [vmem:[#allocation2 + $0x200] sm:$0xff]  ;;  %v161_v32 = vld [vmem:[#allocation2 + $0x210] sm:$0xff] }
  0x42   :  { %274 = vmatpush1.msra.mxu0 %v183_v19  ;;  %345 = vmatpush1.msra.mxu1 %v185_v20  ;;  %v152_v33 = vld [vmem:[#allocation2 + $0x1c8] sm:$0xff]  ;;  %v154_v34 = vld [vmem:[#allocation2 + $0x1d8] sm:$0xff]  ;;  %v151_v35 = vld [vmem:[#allocation2 + $0x1c0] sm:$0xff] }
  0x43   :  { %275 = vmatprep.subr.mxu0 %v176_v21  ;;  %346 = vmatprep.subr.mxu1 %v178_v22  ;;  %v153_v36 = vld [vmem:[#allocation2 + $0x1d0] sm:$0xff]  ;;  %v144_v37 = vld [vmem:[#allocation2 + $0x188] sm:$0xff]  ;;  %v146_v38 = vld [vmem:[#allocation2 + $0x198] sm:$0xff] }
  0x44   :  { %276 = vmatpush1.msra.mxu0 %v175_v23  ;;  %347 = vmatpush1.msra.mxu1 %v177_v24  ;;  %v143_v39 = vld [vmem:[#allocation2 + $0x180] sm:$0xff]  ;;  %v145_v40 = vld [vmem:[#allocation2 + $0x190] sm:$0xff]  ;;  %v136_v41 = vld [vmem:[#allocation2 + $0x148] sm:$0xff] }
  0x45   :  { %277 = vmatprep.subr.mxu0 %v168_v25  ;;  %348 = vmatprep.subr.mxu1 %v170_v26  ;;  %v138_v42 = vld [vmem:[#allocation2 + $0x158] sm:$0xff]  ;;  %v135_v43 = vld [vmem:[#allocation2 + $0x140] sm:$0xff]  ;;  %v137_v44 = vld [vmem:[#allocation2 + $0x150] sm:$0xff] }
  0x46   :  { %278 = vmatpush1.msra.mxu0 %v167_v27  ;;  %349 = vmatpush1.msra.mxu1 %v169_v28  ;;  %v128_v45 = vld [vmem:[#allocation2 + $0x108] sm:$0xff]  ;;  %v130_v46 = vld [vmem:[#allocation2 + $0x118] sm:$0xff]  ;;  %v127_v47 = vld [vmem:[#allocation2 + $0x100] sm:$0xff] }
  0x47   :  { %279 = vmatprep.subr.mxu0 %v160_v29  ;;  %350 = vmatprep.subr.mxu1 %v162_v30  ;;  %v129_v48 = vld [vmem:[#allocation2 + $0x110] sm:$0xff]  ;;  %v120_v49 = vld [vmem:[#allocation2 + $0xc8] sm:$0xff]  ;;  %v122_v50 = vld [vmem:[#allocation2 + $0xd8] sm:$0xff] }
  0x48   :  { %280 = vmatpush1.msra.mxu0 %v159_v31  ;;  %351 = vmatpush1.msra.mxu1 %v161_v32  ;;  %v119_v51 = vld [vmem:[#allocation2 + $0xc0] sm:$0xff]  ;;  %v121_v52 = vld [vmem:[#allocation2 + $0xd0] sm:$0xff]  ;;  %v112_v53 = vld [vmem:[#allocation2 + $0x88] sm:$0xff] }
  0x49   :  { %281 = vmatprep.subr.mxu0 %v152_v33  ;;  %352 = vmatprep.subr.mxu1 %v154_v34  ;;  %v114_v54 = vld [vmem:[#allocation2 + $0x98] sm:$0xff]  ;;  %v111_v55 = vld [vmem:[#allocation2 + $0x80] sm:$0xff]  ;;  %v113_v56 = vld [vmem:[#allocation2 + $0x90] sm:$0xff] }
  0x4a   :  { %282 = vmatpush1.msra.mxu0 %v151_v35  ;;  %353 = vmatpush1.msra.mxu1 %v153_v36  ;;  %v104_v57 = vld [vmem:[#allocation2 + $0x48] sm:$0xff]  ;;  %v106_v58 = vld [vmem:[#allocation2 + $0x58] sm:$0xff]  ;;  %v103_v59 = vld [vmem:[#allocation2 + $0x40] sm:$0xff] }
  0x4b   :  { %283 = vmatprep.subr.mxu0 %v144_v37  ;;  %354 = vmatprep.subr.mxu1 %v146_v38  ;;  %v105_v60 = vld [vmem:[#allocation2 + $0x50] sm:$0xff]  ;;  %v96_v61 = vld [vmem:[#allocation2 + $0x8] sm:$0xff]  ;;  %v98_v62 = vld [vmem:[#allocation2 + $0x18] sm:$0xff] }
  0x4c   :  { %284 = vmatpush1.msra.mxu0 %v143_v39  ;;  %355 = vmatpush1.msra.mxu1 %v145_v40  ;;  %v95_v63 = vld [vmem:[#allocation2] sm:$0xff]  ;;  %v97_v1 = vld [vmem:[#allocation2 + $0x10] sm:$0xff]  ;;  %v220_v3 = vld [vmem:[#allocation2 + $0x3e8] sm:$0xff] }
  0x4d   :  { %285 = vmatprep.subr.mxu0 %v136_v41  ;;  %356 = vmatprep.subr.mxu1 %v138_v42  ;;  %v2070_v2 = vld [vmem:[%s2232_s0] sm:$0xff]  ;;  %v222_v4 = vld [vmem:[#allocation2 + $0x3f8] sm:$0xff]  ;;  %v221_v6 = vld [vmem:[#allocation2 + $0x3f0] sm:$0xff] }
  0x4e   :  { %286 = vmatpush1.msra.mxu0 %v135_v43  ;;  %357 = vmatpush1.msra.mxu1 %v137_v44  ;;  %v219_v5 = vld [vmem:[#allocation2 + $0x3e0] sm:$0xff]  ;;  %v212_v7 = vld [vmem:[#allocation2 + $0x3a8] sm:$0xff]  ;;  %v214_v8 = vld [vmem:[#allocation2 + $0x3b8] sm:$0xff] }
  0x4f   :  { %287 = vmatprep.subr.mxu0 %v128_v45  ;;  %358 = vmatprep.subr.mxu1 %v130_v46  ;;  %v211_v9 = vld [vmem:[#allocation2 + $0x3a0] sm:$0xff]  ;;  %v213_v10 = vld [vmem:[#allocation2 + $0x3b0] sm:$0xff]  ;;  %v204_v11 = vld [vmem:[#allocation2 + $0x368] sm:$0xff] }
  0x50   :  { %288 = vmatpush1.msra.mxu0 %v127_v47  ;;  %359 = vmatpush1.msra.mxu1 %v129_v48  ;;  %v206_v12 = vld [vmem:[#allocation2 + $0x378] sm:$0xff]  ;;  %v203_v13 = vld [vmem:[#allocation2 + $0x360] sm:$0xff]  ;;  %v205_v14 = vld [vmem:[#allocation2 + $0x370] sm:$0xff] }
  0x51   :  { %289 = vmatprep.subr.mxu0 %v120_v49  ;;  %360 = vmatprep.subr.mxu1 %v122_v50  ;;  %v196_v15 = vld [vmem:[#allocation2 + $0x328] sm:$0xff]  ;;  %v198_v16 = vld [vmem:[#allocation2 + $0x338] sm:$0xff]  ;;  %v195_v17 = vld [vmem:[#allocation2 + $0x320] sm:$0xff] }
  0x52   :  { %290 = vmatpush1.msra.mxu0 %v119_v51  ;;  %361 = vmatpush1.msra.mxu1 %v121_v52  ;;  %v197_v18 = vld [vmem:[#allocation2 + $0x330] sm:$0xff]  ;;  %v188_v19 = vld [vmem:[#allocation2 + $0x2e8] sm:$0xff]  ;;  %v190_v20 = vld [vmem:[#allocation2 + $0x2f8] sm:$0xff] }
  0x53   :  { %291 = vmatprep.subr.mxu0 %v112_v53  ;;  %362 = vmatprep.subr.mxu1 %v114_v54  ;;  %v187_v21 = vld [vmem:[#allocation2 + $0x2e0] sm:$0xff]  ;;  %v189_v22 = vld [vmem:[#allocation2 + $0x2f0] sm:$0xff]  ;;  %v180_v23 = vld [vmem:[#allocation2 + $0x2a8] sm:$0xff] }
  0x54   :  { %292 = vmatpush1.msra.mxu0 %v111_v55  ;;  %363 = vmatpush1.msra.mxu1 %v113_v56  ;;  %v182_v24 = vld [vmem:[#allocation2 + $0x2b8] sm:$0xff]  ;;  %v179_v25 = vld [vmem:[#allocation2 + $0x2a0] sm:$0xff]  ;;  %v181_v26 = vld [vmem:[#allocation2 + $0x2b0] sm:$0xff] }
  0x55   :  { %293 = vmatprep.subr.mxu0 %v104_v57  ;;  %364 = vmatprep.subr.mxu1 %v106_v58  ;;  %v172_v27 = vld [vmem:[#allocation2 + $0x268] sm:$0xff]  ;;  %v174_v28 = vld [vmem:[#allocation2 + $0x278] sm:$0xff]  ;;  %v171_v29 = vld [vmem:[#allocation2 + $0x260] sm:$0xff] }
  0x56   :  { %294 = vmatpush1.msra.mxu0 %v103_v59  ;;  %365 = vmatpush1.msra.mxu1 %v105_v60  ;;  %v173_v30 = vld [vmem:[#allocation2 + $0x270] sm:$0xff]  ;;  %v164_v31 = vld [vmem:[#allocation2 + $0x228] sm:$0xff]  ;;  %v166_v32 = vld [vmem:[#allocation2 + $0x238] sm:$0xff] }
  0x57   :  { %295 = vmatprep.subr.mxu0 %v96_v61  ;;  %366 = vmatprep.subr.mxu1 %v98_v62  ;;  %v163_v33 = vld [vmem:[#allocation2 + $0x220] sm:$0xff]  ;;  %v165_v34 = vld [vmem:[#allocation2 + $0x230] sm:$0xff]  ;;  %v156_v35 = vld [vmem:[#allocation2 + $0x1e8] sm:$0xff] }
  0x58   :  { %296 = vmatpush1.msra.mxu0 %v95_v63  ;;  %367 = vmatpush1.msra.mxu1 %v97_v1  ;;  %v158_v36 = vld [vmem:[#allocation2 + $0x1f8] sm:$0xff]  ;;  %v155_v37 = vld [vmem:[#allocation2 + $0x1e0] sm:$0xff]  ;;  %v157_v38 = vld [vmem:[#allocation2 + $0x1f0] sm:$0xff] }
  0x59   :  { %330 = vmatmul.mubr.f32.vlgmr.msra.gmra.mxu0 %v2070_v2  ;;  %401 = vmatmul.mubr.f32.vlgmr.msra.gmra.mxu1 %v2070_v2  ;;  %v148_v39 = vld [vmem:[#allocation2 + $0x1a8] sm:$0xff]  ;;  %v150_v40 = vld [vmem:[#allocation2 + $0x1b8] sm:$0xff]  ;;  %v147_v41 = vld [vmem:[#allocation2 + $0x1a0] sm:$0xff] }
  0x5a   :  { %407 = vmatprep.subr.mxu0 %v220_v3  ;;  %478 = vmatprep.subr.mxu1 %v222_v4  ;;  %v149_v42 = vld [vmem:[#allocation2 + $0x1b0] sm:$0xff]  ;;  %v140_v43 = vld [vmem:[#allocation2 + $0x168] sm:$0xff]  ;;  %v142_v44 = vld [vmem:[#allocation2 + $0x178] sm:$0xff] }
  0x5b   :  { %408 = vmatpush1.msra.mxu0 %v219_v5  ;;  %479 = vmatpush1.msra.mxu1 %v221_v6  ;;  %v139_v45 = vld [vmem:[#allocation2 + $0x160] sm:$0xff]  ;;  %v141_v46 = vld [vmem:[#allocation2 + $0x170] sm:$0xff]  ;;  %v132_v47 = vld [vmem:[#allocation2 + $0x128] sm:$0xff] }
  0x5c   :  { %409 = vmatprep.subr.mxu0 %v212_v7  ;;  %480 = vmatprep.subr.mxu1 %v214_v8  ;;  %v134_v48 = vld [vmem:[#allocation2 + $0x138] sm:$0xff]  ;;  %v131_v49 = vld [vmem:[#allocation2 + $0x120] sm:$0xff]  ;;  %v133_v50 = vld [vmem:[#allocation2 + $0x130] sm:$0xff] }
  0x5d   :  { %410 = vmatpush1.msra.mxu0 %v211_v9  ;;  %481 = vmatpush1.msra.mxu1 %v213_v10  ;;  %v124_v51 = vld [vmem:[#allocation2 + $0xe8] sm:$0xff]  ;;  %v126_v52 = vld [vmem:[#allocation2 + $0xf8] sm:$0xff]  ;;  %v123_v53 = vld [vmem:[#allocation2 + $0xe0] sm:$0xff] }
  0x5e   :  { %411 = vmatprep.subr.mxu0 %v204_v11  ;;  %482 = vmatprep.subr.mxu1 %v206_v12  ;;  %v125_v54 = vld [vmem:[#allocation2 + $0xf0] sm:$0xff]  ;;  %v116_v55 = vld [vmem:[#allocation2 + $0xa8] sm:$0xff]  ;;  %v118_v56 = vld [vmem:[#allocation2 + $0xb8] sm:$0xff] }
  0x5f   :  { %412 = vmatpush1.msra.mxu0 %v203_v13  ;;  %483 = vmatpush1.msra.mxu1 %v205_v14  ;;  %v115_v57 = vld [vmem:[#allocation2 + $0xa0] sm:$0xff]  ;;  %v117_v58 = vld [vmem:[#allocation2 + $0xb0] sm:$0xff]  ;;  %v108_v59 = vld [vmem:[#allocation2 + $0x68] sm:$0xff] }
  0x60   :  { %413 = vmatprep.subr.mxu0 %v196_v15  ;;  %484 = vmatprep.subr.mxu1 %v198_v16  ;;  %v110_v60 = vld [vmem:[#allocation2 + $0x78] sm:$0xff]  ;;  %v107_v61 = vld [vmem:[#allocation2 + $0x60] sm:$0xff]  ;;  %v100_v62 = vld [vmem:[#allocation2 + $0x28] sm:$0xff] }
  0x61   :  { %414 = vmatpush1.msra.mxu0 %v195_v17  ;;  %485 = vmatpush1.msra.mxu1 %v197_v18  ;;  %v109_v63 = vld [vmem:[#allocation2 + $0x70] sm:$0xff]  ;;  %v99_v1 = vld [vmem:[#allocation2 + $0x20] sm:$0xff]  ;;  %v102_v3 = vld [vmem:[#allocation2 + $0x38] sm:$0xff] }
  0x62   :  { %415 = vmatprep.subr.mxu0 %v188_v19  ;;  %486 = vmatprep.subr.mxu1 %v190_v20  ;;  %v101_v4 = vld [vmem:[#allocation2 + $0x30] sm:$0xff]  ;;  %v588_v5 = vld [vmem:[#allocation5 + $0xf8] sm:$0xff]  ;;  %v586_v9 = vld [vmem:[#allocation5 + $0xe8] sm:$0xff] }
  0x63   :  { %416 = vmatpush1.msra.mxu0 %v187_v21  ;;  %487 = vmatpush1.msra.mxu1 %v189_v22  ;;  %v652_v6 = vld [vmem:[#allocation5 + $0x2f8] sm:$0xff]  ;;  %v587_v7 = vld [vmem:[#allocation5 + $0xf0] sm:$0xff]  ;;  %v650_v10 = vld [vmem:[#allocation5 + $0x2e8] sm:$0xff] }
  0x64   :  { %417 = vmatprep.subr.mxu0 %v180_v23  ;;  %488 = vmatprep.subr.mxu1 %v182_v24  ;;  %v651_v8 = vld [vmem:[#allocation5 + $0x2f0] sm:$0xff]  ;;  %v585_v11 = vld [vmem:[#allocation5 + $0xe0] sm:$0xff]  ;;  %v584_v13 = vld [vmem:[#allocation5 + $0xd8] sm:$0xff] }
  0x65   :  { %418 = vmatpush1.msra.mxu0 %v179_v25  ;;  %489 = vmatpush1.msra.mxu1 %v181_v26  ;;  %v649_v12 = vld [vmem:[#allocation5 + $0x2e0] sm:$0xff]  ;;  %v648_v14 = vld [vmem:[#allocation5 + $0x2d8] sm:$0xff]  ;;  %v583_v15 = vld [vmem:[#allocation5 + $0xd0] sm:$0xff] }
  0x66   :  { %419 = vmatprep.subr.mxu0 %v172_v27  ;;  %490 = vmatprep.subr.mxu1 %v174_v28  ;;  %v647_v16 = vld [vmem:[#allocation5 + $0x2d0] sm:$0xff]  ;;  %v582_v17 = vld [vmem:[#allocation5 + $0xc8] sm:$0xff]  ;;  %v581_v18 = vld [vmem:[#allocation5 + $0xc0] sm:$0xff] }
  0x67   :  { %420 = vmatpush1.msra.mxu0 %v171_v29  ;;  %491 = vmatpush1.msra.mxu1 %v173_v30  ;;  %v645_v19 = vld [vmem:[#allocation5 + $0x2c0] sm:$0xff]  ;;  %v644_v20 = vld [vmem:[#allocation5 + $0x2b8] sm:$0xff]  ;;  %v579_v21 = vld [vmem:[#allocation5 + $0xb0] sm:$0xff] }
  0x68   :  { %421 = vmatprep.subr.mxu0 %v164_v31  ;;  %492 = vmatprep.subr.mxu1 %v166_v32  ;;  %v643_v22 = vld [vmem:[#allocation5 + $0x2b0] sm:$0xff]  ;;  %v578_v23 = vld [vmem:[#allocation5 + $0xa8] sm:$0xff]  ;;  %v577_v25 = vld [vmem:[#allocation5 + $0xa0] sm:$0xff] }
  0x69   :  { %422 = vmatpush1.msra.mxu0 %v163_v33  ;;  %493 = vmatpush1.msra.mxu1 %v165_v34  ;;  %v642_v24 = vld [vmem:[#allocation5 + $0x2a8] sm:$0xff]  ;;  %v641_v26 = vld [vmem:[#allocation5 + $0x2a0] sm:$0xff]  ;;  %v576_v27 = vld [vmem:[#allocation5 + $0x98] sm:$0xff] }
  0x6a   :  { %423 = vmatprep.subr.mxu0 %v156_v35  ;;  %494 = vmatprep.subr.mxu1 %v158_v36  ;;  %v640_v28 = vld [vmem:[#allocation5 + $0x298] sm:$0xff]  ;;  %v575_v29 = vld [vmem:[#allocation5 + $0x90] sm:$0xff]  ;;  %v574_v31 = vld [vmem:[#allocation5 + $0x88] sm:$0xff] }
  0x6b   :  { %424 = vmatpush1.msra.mxu0 %v155_v37  ;;  %495 = vmatpush1.msra.mxu1 %v157_v38  ;;  %v639_v30 = vld [vmem:[#allocation5 + $0x290] sm:$0xff]  ;;  %v638_v32 = vld [vmem:[#allocation5 + $0x288] sm:$0xff]  ;;  %v573_v33 = vld [vmem:[#allocation5 + $0x80] sm:$0xff] }
  0x6c   :  { %425 = vmatprep.subr.mxu0 %v148_v39  ;;  %496 = vmatprep.subr.mxu1 %v150_v40  ;;  %v637_v34 = vld [vmem:[#allocation5 + $0x280] sm:$0xff]  ;;  %v572_v35 = vld [vmem:[#allocation5 + $0x78] sm:$0xff]  ;;  %v571_v37 = vld [vmem:[#allocation5 + $0x70] sm:$0xff] }
  0x6d   :  { %426 = vmatpush1.msra.mxu0 %v147_v41  ;;  %497 = vmatpush1.msra.mxu1 %v149_v42  ;;  %v636_v36 = vld [vmem:[#allocation5 + $0x278] sm:$0xff]  ;;  %v635_v38 = vld [vmem:[#allocation5 + $0x270] sm:$0xff]  ;;  %v570_v39 = vld [vmem:[#allocation5 + $0x68] sm:$0xff] }
  0x6e   :  { %427 = vmatprep.subr.mxu0 %v140_v43  ;;  %498 = vmatprep.subr.mxu1 %v142_v44  ;;  %v634_v40 = vld [vmem:[#allocation5 + $0x268] sm:$0xff]  ;;  %v569_v41 = vld [vmem:[#allocation5 + $0x60] sm:$0xff]  ;;  %v568_v43 = vld [vmem:[#allocation5 + $0x58] sm:$0xff] }
  0x6f   :  { %428 = vmatpush1.msra.mxu0 %v139_v45  ;;  %499 = vmatpush1.msra.mxu1 %v141_v46  ;;  %v633_v42 = vld [vmem:[#allocation5 + $0x260] sm:$0xff]  ;;  %v632_v44 = vld [vmem:[#allocation5 + $0x258] sm:$0xff]  ;;  %v567_v45 = vld [vmem:[#allocation5 + $0x50] sm:$0xff] }
  0x70   :  { %429 = vmatprep.subr.mxu0 %v132_v47  ;;  %500 = vmatprep.subr.mxu1 %v134_v48  ;;  %v631_v46 = vld [vmem:[#allocation5 + $0x250] sm:$0xff]  ;;  %v566_v47 = vld [vmem:[#allocation5 + $0x48] sm:$0xff] }
  0x71   :  { %430 = vmatpush1.msra.mxu0 %v131_v49  ;;  %501 = vmatpush1.msra.mxu1 %v133_v50  ;;  %v630_v48 = vld [vmem:[#allocation5 + $0x248] sm:$0xff]  ;;  %v565_v49 = vld [vmem:[#allocation5 + $0x40] sm:$0xff] }
  0x72   :  { %431 = vmatprep.subr.mxu0 %v124_v51  ;;  %502 = vmatprep.subr.mxu1 %v126_v52  ;;  %v629_v50 = vld [vmem:[#allocation5 + $0x240] sm:$0xff]  ;;  %v564_v51 = vld [vmem:[#allocation5 + $0x38] sm:$0xff] }
  0x73   :  { %432 = vmatpush1.msra.mxu0 %v123_v53  ;;  %503 = vmatpush1.msra.mxu1 %v125_v54  ;;  %v628_v52 = vld [vmem:[#allocation5 + $0x238] sm:$0xff]  ;;  %v563_v53 = vld [vmem:[#allocation5 + $0x30] sm:$0xff] }
  0x74   :  { %433 = vmatprep.subr.mxu0 %v116_v55  ;;  %504 = vmatprep.subr.mxu1 %v118_v56  ;;  %v627_v54 = vld [vmem:[#allocation5 + $0x230] sm:$0xff]  ;;  %v562_v55 = vld [vmem:[#allocation5 + $0x28] sm:$0xff] }
  0x75   :  { %434 = vmatpush1.msra.mxu0 %v115_v57  ;;  %505 = vmatpush1.msra.mxu1 %v117_v58  ;;  %v626_v56 = vld [vmem:[#allocation5 + $0x228] sm:$0xff]  ;;  %v561_v57 = vld [vmem:[#allocation5 + $0x20] sm:$0xff] }
  0x76   :  { %435 = vmatprep.subr.mxu0 %v108_v59  ;;  %506 = vmatprep.subr.mxu1 %v110_v60  ;;  %v625_v58 = vld [vmem:[#allocation5 + $0x220] sm:$0xff]  ;;  %v560_v59 = vld [vmem:[#allocation5 + $0x18] sm:$0xff] }
  0x77   :  { %436 = vmatpush1.msra.mxu0 %v107_v61  ;;  %471 = vmatprep.mubr.f32.mxu0 %v1985_v0  ;;  %v624_v60 = vld [vmem:[#allocation5 + $0x218] sm:$0xff]  ;;  %v559_v61 = vld [vmem:[#allocation5 + $0x10] sm:$0xff] }
  0x78   :  { %437 = vmatprep.subr.mxu0 %v100_v62  ;;  %507 = vmatpush1.msra.mxu1 %v109_v63  ;;  %v623_v62 = vld [vmem:[#allocation5 + $0x210] sm:$0xff]  ;;  %v558_v63 = vld [vmem:[#allocation5 + $0x8] sm:$0xff] }
  0x79   :  { %438 = vmatpush1.msra.mxu0 %v99_v1  ;;  %508 = vmatprep.subr.mxu1 %v102_v3  ;;  %v622_v1 = vld [vmem:[#allocation5 + $0x208] sm:$0xff]  ;;  %v557_v3 = vld [vmem:[#allocation5] sm:$0xff] }
  0x7a   :  { %472 = vmatmul.mubr.f32.vlgmr.msra.gmra.mxu0 %v2070_v2  ;;  %509 = vmatpush1.msra.mxu1 %v101_v4  ;;  %v621_v4 = vld [vmem:[#allocation5 + $0x200] sm:$0xff] }
  0x7b   :  { %542 = vmatprep.mubr.f32.mxu1 %v1985_v0  ;;  %825 = vmatprep.subr.mxu0 %v588_v5  ;;  %v646_v0 = vld [vmem:[#allocation5 + $0x2c8] sm:$0xff]  ;;  %v620_v5 = vld [vmem:[#allocation5 + $0x1f8] sm:$0xff] }
  0x7c   :  { %543 = vmatmul.mubr.f32.vlgmr.msra.gmra.mxu1 %v2070_v2  ;;  %896 = vmatprep.subr.mxu1 %v652_v6  ;;  %v580_v2 = vld [vmem:[#allocation5 + $0xb8] sm:$0xff] }
  0x7d   :  { %826 = vmatpush1.msra.mxu0 %v587_v7  ;;  %897 = vmatpush1.msra.mxu1 %v651_v8  ;;  %v684_v6 = vld [vmem:[#allocation5 + $0x3f8] sm:$0xff]  ;;  %v619_v7 = vld [vmem:[#allocation5 + $0x1f0] sm:$0xff] }
  0x7e   :  { %827 = vmatprep.subr.mxu0 %v586_v9  ;;  %898 = vmatprep.subr.mxu1 %v650_v10  ;;  %v683_v8 = vld [vmem:[#allocation5 + $0x3f0] sm:$0xff]  ;;  %v618_v9 = vld [vmem:[#allocation5 + $0x1e8] sm:$0xff] }
  0x7f   :  { %828 = vmatpush1.msra.mxu0 %v585_v11  ;;  %899 = vmatpush1.msra.mxu1 %v649_v12  ;;  %v682_v10 = vld [vmem:[#allocation5 + $0x3e8] sm:$0xff]  ;;  %v617_v11 = vld [vmem:[#allocation5 + $0x1e0] sm:$0xff] }
  0x80   :  { %829 = vmatprep.subr.mxu0 %v584_v13  ;;  %900 = vmatprep.subr.mxu1 %v648_v14  ;;  %v681_v12 = vld [vmem:[#allocation5 + $0x3e0] sm:$0xff]  ;;  %v616_v13 = vld [vmem:[#allocation5 + $0x1d8] sm:$0xff] }
  0x81   :  { %830 = vmatpush1.msra.mxu0 %v583_v15  ;;  %901 = vmatpush1.msra.mxu1 %v647_v16  ;;  %v680_v14 = vld [vmem:[#allocation5 + $0x3d8] sm:$0xff]  ;;  %v615_v15 = vld [vmem:[#allocation5 + $0x1d0] sm:$0xff] }
  0x82   :  { %831 = vmatprep.subr.mxu0 %v582_v17  ;;  %902 = vmatprep.subr.mxu1 %v646_v0  ;;  %v679_v16 = vld [vmem:[#allocation5 + $0x3d0] sm:$0xff]  ;;  %v614_v17 = vld [vmem:[#allocation5 + $0x1c8] sm:$0xff] }
  0x83   :  { %832 = vmatpush1.msra.mxu0 %v581_v18  ;;  %903 = vmatpush1.msra.mxu1 %v645_v19  ;;  %v678_v0 = vld [vmem:[#allocation5 + $0x3c8] sm:$0xff]  ;;  %v613_v18 = vld [vmem:[#allocation5 + $0x1c0] sm:$0xff] }
  0x84   :  { %833 = vmatprep.subr.mxu0 %v580_v2  ;;  %904 = vmatprep.subr.mxu1 %v644_v20  ;;  %v677_v19 = vld [vmem:[#allocation5 + $0x3c0] sm:$0xff]  ;;  %v612_v2 = vld [vmem:[#allocation5 + $0x1b8] sm:$0xff] }
  0x85   :  { %834 = vmatpush1.msra.mxu0 %v579_v21  ;;  %905 = vmatpush1.msra.mxu1 %v643_v22  ;;  %v676_v20 = vld [vmem:[#allocation5 + $0x3b8] sm:$0xff]  ;;  %v611_v21 = vld [vmem:[#allocation5 + $0x1b0] sm:$0xff] }
  0x86   :  { %835 = vmatprep.subr.mxu0 %v578_v23  ;;  %906 = vmatprep.subr.mxu1 %v642_v24  ;;  %v675_v22 = vld [vmem:[#allocation5 + $0x3b0] sm:$0xff]  ;;  %v610_v23 = vld [vmem:[#allocation5 + $0x1a8] sm:$0xff] }
  0x87   :  { %836 = vmatpush1.msra.mxu0 %v577_v25  ;;  %907 = vmatpush1.msra.mxu1 %v641_v26  ;;  %v674_v24 = vld [vmem:[#allocation5 + $0x3a8] sm:$0xff]  ;;  %v609_v25 = vld [vmem:[#allocation5 + $0x1a0] sm:$0xff] }
  0x88   :  { %837 = vmatprep.subr.mxu0 %v576_v27  ;;  %908 = vmatprep.subr.mxu1 %v640_v28  ;;  %v673_v26 = vld [vmem:[#allocation5 + $0x3a0] sm:$0xff]  ;;  %v608_v27 = vld [vmem:[#allocation5 + $0x198] sm:$0xff] }
  0x89   :  { %838 = vmatpush1.msra.mxu0 %v575_v29  ;;  %909 = vmatpush1.msra.mxu1 %v639_v30  ;;  %v672_v28 = vld [vmem:[#allocation5 + $0x398] sm:$0xff]  ;;  %v607_v29 = vld [vmem:[#allocation5 + $0x190] sm:$0xff] }
  0x8a   :  { %839 = vmatprep.subr.mxu0 %v574_v31  ;;  %910 = vmatprep.subr.mxu1 %v638_v32  ;;  %v671_v30 = vld [vmem:[#allocation5 + $0x390] sm:$0xff]  ;;  %v606_v31 = vld [vmem:[#allocation5 + $0x188] sm:$0xff] }
  0x8b   :  { %840 = vmatpush1.msra.mxu0 %v573_v33  ;;  %911 = vmatpush1.msra.mxu1 %v637_v34  ;;  %v670_v32 = vld [vmem:[#allocation5 + $0x388] sm:$0xff]  ;;  %v605_v33 = vld [vmem:[#allocation5 + $0x180] sm:$0xff] }
  0x8c   :  { %841 = vmatprep.subr.mxu0 %v572_v35  ;;  %912 = vmatprep.subr.mxu1 %v636_v36  ;;  %v669_v34 = vld [vmem:[#allocation5 + $0x380] sm:$0xff]  ;;  %v604_v35 = vld [vmem:[#allocation5 + $0x178] sm:$0xff] }
  0x8d   :  { %842 = vmatpush1.msra.mxu0 %v571_v37  ;;  %913 = vmatpush1.msra.mxu1 %v635_v38  ;;  %v668_v36 = vld [vmem:[#allocation5 + $0x378] sm:$0xff]  ;;  %v603_v37 = vld [vmem:[#allocation5 + $0x170] sm:$0xff] }
  0x8e   :  { %843 = vmatprep.subr.mxu0 %v570_v39  ;;  %914 = vmatprep.subr.mxu1 %v634_v40  ;;  %v667_v38 = vld [vmem:[#allocation5 + $0x370] sm:$0xff]  ;;  %v602_v39 = vld [vmem:[#allocation5 + $0x168] sm:$0xff] }
  0x8f   :  { %844 = vmatpush1.msra.mxu0 %v569_v41  ;;  %915 = vmatpush1.msra.mxu1 %v633_v42  ;;  %v666_v40 = vld [vmem:[#allocation5 + $0x368] sm:$0xff]  ;;  %v601_v41 = vld [vmem:[#allocation5 + $0x160] sm:$0xff] }
  0x90   :  { %845 = vmatprep.subr.mxu0 %v568_v43  ;;  %916 = vmatprep.subr.mxu1 %v632_v44  ;;  %v665_v42 = vld [vmem:[#allocation5 + $0x360] sm:$0xff]  ;;  %v600_v43 = vld [vmem:[#allocation5 + $0x158] sm:$0xff] }
  0x91   :  { %846 = vmatpush1.msra.mxu0 %v567_v45  ;;  %917 = vmatpush1.msra.mxu1 %v631_v46  ;;  %v664_v44 = vld [vmem:[#allocation5 + $0x358] sm:$0xff]  ;;  %v599_v45 = vld [vmem:[#allocation5 + $0x150] sm:$0xff] }
  0x92   :  { %847 = vmatprep.subr.mxu0 %v566_v47  ;;  %918 = vmatprep.subr.mxu1 %v630_v48  ;;  %v663_v46 = vld [vmem:[#allocation5 + $0x350] sm:$0xff]  ;;  %v598_v47 = vld [vmem:[#allocation5 + $0x148] sm:$0xff] }
  0x93   :  { %848 = vmatpush1.msra.mxu0 %v565_v49  ;;  %919 = vmatpush1.msra.mxu1 %v629_v50  ;;  %v662_v48 = vld [vmem:[#allocation5 + $0x348] sm:$0xff]  ;;  %v597_v49 = vld [vmem:[#allocation5 + $0x140] sm:$0xff] }
  0x94   :  { %849 = vmatprep.subr.mxu0 %v564_v51  ;;  %920 = vmatprep.subr.mxu1 %v628_v52  ;;  %v661_v50 = vld [vmem:[#allocation5 + $0x340] sm:$0xff]  ;;  %v596_v51 = vld [vmem:[#allocation5 + $0x138] sm:$0xff] }
  0x95   :  { %850 = vmatpush1.msra.mxu0 %v563_v53  ;;  %921 = vmatpush1.msra.mxu1 %v627_v54  ;;  %v660_v52 = vld [vmem:[#allocation5 + $0x338] sm:$0xff]  ;;  %v595_v53 = vld [vmem:[#allocation5 + $0x130] sm:$0xff] }
  0x96   :  { %851 = vmatprep.subr.mxu0 %v562_v55  ;;  %922 = vmatprep.subr.mxu1 %v626_v56  ;;  %v659_v54 = vld [vmem:[#allocation5 + $0x330] sm:$0xff]  ;;  %v594_v55 = vld [vmem:[#allocation5 + $0x128] sm:$0xff] }
  0x97   :  { %852 = vmatpush1.msra.mxu0 %v561_v57  ;;  %923 = vmatpush1.msra.mxu1 %v625_v58  ;;  %v658_v56 = vld [vmem:[#allocation5 + $0x328] sm:$0xff]  ;;  %v593_v57 = vld [vmem:[#allocation5 + $0x120] sm:$0xff] }
  0x98   :  { %853 = vmatprep.subr.mxu0 %v560_v59  ;;  %924 = vmatprep.subr.mxu1 %v624_v60  ;;  %v657_v58 = vld [vmem:[#allocation5 + $0x320] sm:$0xff]  ;;  %v592_v59 = vld [vmem:[#allocation5 + $0x118] sm:$0xff] }
  0x99   :  { %854 = vmatpush1.msra.mxu0 %v559_v61  ;;  %925 = vmatpush1.msra.mxu1 %v623_v62  ;;  %v656_v60 = vld [vmem:[#allocation5 + $0x318] sm:$0xff]  ;;  %v591_v61 = vld [vmem:[#allocation5 + $0x110] sm:$0xff] }
  0x9a   :  { %855 = vmatprep.subr.mxu0 %v558_v63  ;;  %926 = vmatprep.subr.mxu1 %v622_v1  ;;  %v655_v62 = vld [vmem:[#allocation5 + $0x310] sm:$0xff]  ;;  %v590_v63 = vld [vmem:[#allocation5 + $0x108] sm:$0xff] }
  0x9b   :  { %856 = vmatpush1.msra.mxu0 %v557_v3  ;;  %927 = vmatpush1.msra.mxu1 %v621_v4  ;;  %v654_v1 = vld [vmem:[#allocation5 + $0x308] sm:$0xff]  ;;  %v589_v3 = vld [vmem:[#allocation5 + $0x100] sm:$0xff] }
  0x9c   :  { %857 = vmatprep.subr.mxu0 %v620_v5  ;;  %928 = vmatprep.subr.mxu1 %v684_v6  ;;  %v653_v4 = vld [vmem:[#allocation5 + $0x300] sm:$0xff]  ;;  %v716_v5 = vld [vmem:[#allocation5 + $0x4f8] sm:$0xff] }
  0x9d   :  { %858 = vmatpush2.msra.mxu0 %v619_v7  ;;  %929 = vmatpush2.msra.mxu1 %v683_v8  ;;  %v780_v6 = vld [vmem:[#allocation5 + $0x6f8] sm:$0xff]  ;;  %v225_v7 = vlaneseq }
  0x9e   :  { %859 = vmatprep.subr.mxu0 %v618_v9  ;;  %930 = vmatprep.subr.mxu1 %v682_v10 }
  0x9f   :  { %860 = vmatpush2.msra.mxu0 %v617_v11  ;;  %931 = vmatpush2.msra.mxu1 %v681_v12  ;;  %v2078_v8 = vshrl.u32 %v225_v7, 7  ;;  %v2087_v11 = vld [vmem:[%s2234_s2] sm:$0xff]  ;;  %v759_v7 = vld [vmem:[#allocation5 + $0x650] sm:$0xff] }
  0xa0   :  { %861 = vmatprep.subr.mxu0 %v616_v13  ;;  %932 = vmatprep.subr.mxu1 %v680_v14 }
  0xa1   :  { %862 = vmatpush2.msra.mxu0 %v615_v15  ;;  %933 = vmatpush2.msra.mxu1 %v679_v16  ;;  %v235_v9 = vsub.s32 2, %v2078_v8  ;;  %v2082_v10 = vsub.s32 0, %v2078_v8  ;;  %v2090_v12 = vsub.s32 1, %v2078_v8  ;;  %v239_v13 = vsub.s32 3, %v2078_v8 }
  0xa2   :  { %863 = vmatprep.subr.mxu0 %v614_v17  ;;  %934 = vmatprep.subr.mxu1 %v678_v0 }
  0xa3   :  { %864 = vmatpush2.msra.mxu0 %v613_v18  ;;  %935 = vmatpush2.msra.mxu1 %v677_v19  ;;  %v236_v14 = vrot.slane %v2087_v11, %v235_v9  ;;  %v228_v15 = vrot.slane %v2087_v11, %v2082_v10  ;;  %v232_v16 = vrot.slane %v2087_v11, %v2090_v12 }
  0xa4   :  { %865 = vmatprep.subr.mxu0 %v612_v2  ;;  %936 = vmatprep.subr.mxu1 %v676_v20  ;;  %v240_v17 = vrot.slane %v2087_v11, %v239_v13 }
  0xa5   :  { %866 = vmatpush2.msra.mxu0 %v611_v21  ;;  %937 = vmatpush2.msra.mxu1 %v675_v22 }
  0xa6   :  { %867 = vmatprep.subr.mxu0 %v610_v23  ;;  %938 = vmatprep.subr.mxu1 %v674_v24 }
  0xa7   :  { %868 = vmatpush2.msra.mxu0 %v609_v25  ;;  %939 = vmatpush2.msra.mxu1 %v673_v26 }
  0xa8   :  { %869 = vmatprep.subr.mxu0 %v608_v27  ;;  %940 = vmatprep.subr.mxu1 %v672_v28  ;;  %v715_v28 = vld [vmem:[#allocation5 + $0x4f0] sm:$0xff] }
  0xa9   :  { %870 = vmatpush2.msra.mxu0 %v607_v29  ;;  %941 = vmatpush2.msra.mxu1 %v671_v30  ;;  %v779_v29 = vld [vmem:[#allocation5 + $0x6f0] sm:$0xff]  ;;  %v714_v30 = vld [vmem:[#allocation5 + $0x4e8] sm:$0xff] }
  0xaa   :  { %871 = vmatprep.subr.mxu0 %v606_v31  ;;  %942 = vmatprep.subr.mxu1 %v670_v32  ;;  %v778_v31 = vld [vmem:[#allocation5 + $0x6e8] sm:$0xff]  ;;  %v713_v32 = vld [vmem:[#allocation5 + $0x4e0] sm:$0xff] }
  0xab   :  { %872 = vmatpush2.msra.mxu0 %v605_v33  ;;  %943 = vmatpush2.msra.mxu1 %v669_v34  ;;  %v777_v33 = vld [vmem:[#allocation5 + $0x6e0] sm:$0xff]  ;;  %v712_v34 = vld [vmem:[#allocation5 + $0x4d8] sm:$0xff] }
  0xac   :  { %873 = vmatprep.subr.mxu0 %v604_v35  ;;  %944 = vmatprep.subr.mxu1 %v668_v36  ;;  %v776_v35 = vld [vmem:[#allocation5 + $0x6d8] sm:$0xff]  ;;  %v711_v36 = vld [vmem:[#allocation5 + $0x4d0] sm:$0xff] }
  0xad   :  { %874 = vmatpush2.msra.mxu0 %v603_v37  ;;  %945 = vmatpush2.msra.mxu1 %v667_v38  ;;  %v775_v37 = vld [vmem:[#allocation5 + $0x6d0] sm:$0xff]  ;;  %v710_v38 = vld [vmem:[#allocation5 + $0x4c8] sm:$0xff] }
  0xae   :  { %875 = vmatprep.subr.mxu0 %v602_v39  ;;  %946 = vmatprep.subr.mxu1 %v666_v40  ;;  %v774_v39 = vld [vmem:[#allocation5 + $0x6c8] sm:$0xff]  ;;  %v709_v40 = vld [vmem:[#allocation5 + $0x4c0] sm:$0xff] }
  0xaf   :  { %876 = vmatpush2.msra.mxu0 %v601_v41  ;;  %947 = vmatpush2.msra.mxu1 %v665_v42  ;;  %v773_v41 = vld [vmem:[#allocation5 + $0x6c0] sm:$0xff]  ;;  %v708_v42 = vld [vmem:[#allocation5 + $0x4b8] sm:$0xff] }
  0xb0   :  { %877 = vmatprep.subr.mxu0 %v600_v43  ;;  %948 = vmatprep.subr.mxu1 %v664_v44  ;;  %v772_v43 = vld [vmem:[#allocation5 + $0x6b8] sm:$0xff]  ;;  %v707_v44 = vld [vmem:[#allocation5 + $0x4b0] sm:$0xff] }
  0xb1   :  { %878 = vmatpush2.msra.mxu0 %v599_v45  ;;  %949 = vmatpush2.msra.mxu1 %v663_v46  ;;  %v771_v45 = vld [vmem:[#allocation5 + $0x6b0] sm:$0xff]  ;;  %v706_v46 = vld [vmem:[#allocation5 + $0x4a8] sm:$0xff] }
  0xb2   :  { %879 = vmatprep.subr.mxu0 %v598_v47  ;;  %950 = vmatprep.subr.mxu1 %v662_v48  ;;  %v770_v47 = vld [vmem:[#allocation5 + $0x6a8] sm:$0xff]  ;;  %v705_v48 = vld [vmem:[#allocation5 + $0x4a0] sm:$0xff] }
  0xb3   :  { %880 = vmatpush2.msra.mxu0 %v597_v49  ;;  %951 = vmatpush2.msra.mxu1 %v661_v50  ;;  %v769_v49 = vld [vmem:[#allocation5 + $0x6a0] sm:$0xff]  ;;  %v704_v50 = vld [vmem:[#allocation5 + $0x498] sm:$0xff] }
  0xb4   :  { %881 = vmatprep.subr.mxu0 %v596_v51  ;;  %952 = vmatprep.subr.mxu1 %v660_v52  ;;  %v768_v51 = vld [vmem:[#allocation5 + $0x698] sm:$0xff]  ;;  %v703_v52 = vld [vmem:[#allocation5 + $0x490] sm:$0xff] }
  0xb5   :  { %882 = vmatpush2.msra.mxu0 %v595_v53  ;;  %953 = vmatpush2.msra.mxu1 %v659_v54  ;;  %v767_v53 = vld [vmem:[#allocation5 + $0x690] sm:$0xff]  ;;  %v702_v54 = vld [vmem:[#allocation5 + $0x488] sm:$0xff] }
  0xb6   :  { %883 = vmatprep.subr.mxu0 %v594_v55  ;;  %954 = vmatprep.subr.mxu1 %v658_v56  ;;  %v766_v55 = vld [vmem:[#allocation5 + $0x688] sm:$0xff]  ;;  %v701_v56 = vld [vmem:[#allocation5 + $0x480] sm:$0xff] }
  0xb7   :  { %884 = vmatpush2.msra.mxu0 %v593_v57  ;;  %955 = vmatpush2.msra.mxu1 %v657_v58  ;;  %v765_v57 = vld [vmem:[#allocation5 + $0x680] sm:$0xff]  ;;  %v700_v58 = vld [vmem:[#allocation5 + $0x478] sm:$0xff] }
  0xb8   :  { %885 = vmatprep.subr.mxu0 %v592_v59  ;;  %956 = vmatprep.subr.mxu1 %v656_v60  ;;  %v764_v59 = vld [vmem:[#allocation5 + $0x678] sm:$0xff]  ;;  %v699_v60 = vld [vmem:[#allocation5 + $0x470] sm:$0xff] }
  0xb9   :  { %886 = vmatpush2.msra.mxu0 %v591_v61  ;;  %957 = vmatpush2.msra.mxu1 %v655_v62  ;;  %v763_v61 = vld [vmem:[#allocation5 + $0x670] sm:$0xff]  ;;  %v698_v62 = vld [vmem:[#allocation5 + $0x468] sm:$0xff] }
  0xba   :  { %887 = vmatprep.subr.mxu0 %v590_v63  ;;  %958 = vmatprep.subr.mxu1 %v654_v1  ;;  %v762_v63 = vld [vmem:[#allocation5 + $0x668] sm:$0xff]  ;;  %v697_v1 = vld [vmem:[#allocation5 + $0x460] sm:$0xff] }
  0xbb   :  { %888 = vmatpush2.msra.mxu0 %v589_v3  ;;  %959 = vmatpush2.msra.mxu1 %v653_v4  ;;  %v761_v3 = vld [vmem:[#allocation5 + $0x660] sm:$0xff]  ;;  %v696_v4 = vld [vmem:[#allocation5 + $0x458] sm:$0xff] }
  0xbc   :  { %967 = vmatprep.subr.mxu0 %v716_v5  ;;  %1038 = vmatprep.subr.mxu1 %v780_v6  ;;  %v760_v5 = vld [vmem:[#allocation5 + $0x658] sm:$0xff]  ;;  %v695_v6 = vld [vmem:[#allocation5 + $0x450] sm:$0xff] }
 0x119   :  { %v331_v0 = vpop.f32.mrf.mxu0  ;;  %v402_v18 = vpop.f32.mrf.mxu1 }
 0x11a   :  { %v403_v19 = vadd.f32 %v402_v18, %v236_v14  ;;  %v332_v2 = vadd.f32 %v331_v0, %v228_v15  ;;  %v694_v14 = vld [vmem:[#allocation5 + $0x448] sm:$0xff]  ;;  %v692_v0 = vld [vmem:[#allocation5 + $0x438] sm:$0xff] }
 0x11b   :  { %v333_v20 = vpop.f32.mrf.mxu0  ;;  %v404_v21 = vpop.f32.mrf.mxu1  ;;  %v758_v15 = vld [vmem:[#allocation5 + $0x648] sm:$0xff]  ;;  %v756_v18 = vld [vmem:[#allocation5 + $0x638] sm:$0xff] }
 0x11c   :  { %v334_v22 = vadd.f32 %v333_v20, %v232_v16  ;;  %v405_v23 = vadd.f32 %v404_v21, %v240_v17  ;;  %v551_v24 = vmax.f32 %v403_v19, 0.0  ;;  %v549_v27 = vmax.f32 %v332_v2, 0.0  ;;  %v693_v16 = vld [vmem:[#allocation5 + $0x440] sm:$0xff]  ;;  %v691_v19 = vld [vmem:[#allocation5 + $0x430] sm:$0xff]  ;;  %v690_v20 = vld [vmem:[#allocation5 + $0x428] sm:$0xff] }
 0x11d   :  { %v757_v17 = vld [vmem:[#allocation5 + $0x640] sm:$0xff]  ;;  %v755_v2 = vld [vmem:[#allocation5 + $0x630] sm:$0xff]  ;;  %v754_v21 = vld [vmem:[#allocation5 + $0x628] sm:$0xff] }
 0x11e   :  { %v550_v25 = vmax.f32 %v334_v22, 0.0  ;;  %v552_v26 = vmax.f32 %v405_v23, 0.0  ;;  %v689_v22 = vld [vmem:[#allocation5 + $0x420] sm:$0xff] }
 0x11f   :  { %v753_v23 = vld [vmem:[#allocation5 + $0x620] sm:$0xff] }
 0x120   :  { %889 = vmatprep.mubr.f32.mxu0 %v550_v25  ;;  %960 = vmatprep.mubr.f32.mxu1 %v552_v26  ;;  %v752_v25 = vld [vmem:[#allocation5 + $0x618] sm:$0xff]  ;;  %v687_v26 = vld [vmem:[#allocation5 + $0x410] sm:$0xff] }
 0x121   :  { %890 = vmatmul.mubr.f32.vlgmr.msra.gmra.mxu0 %v549_v27  ;;  %961 = vmatmul.mubr.f32.vlgmr.msra.gmra.mxu1 %v551_v24  ;;  %v688_v24 = vld [vmem:[#allocation5 + $0x418] sm:$0xff]  ;;  %v751_v27 = vld [vmem:[#allocation5 + $0x610] sm:$0xff] }
 0x122   :  { %968 = vmatpush1.msra.mxu0 %v715_v28  ;;  %1039 = vmatpush1.msra.mxu1 %v779_v29  ;;  %v686_v28 = vld [vmem:[#allocation5 + $0x408] sm:$0xff] }
 0x123   :  { %969 = vmatprep.subr.mxu0 %v714_v30  ;;  %1040 = vmatprep.subr.mxu1 %v778_v31  ;;  %v750_v29 = vld [vmem:[#allocation5 + $0x608] sm:$0xff]  ;;  %v685_v30 = vld [vmem:[#allocation5 + $0x400] sm:$0xff] }
 0x124   :  { %970 = vmatpush1.msra.mxu0 %v713_v32  ;;  %1041 = vmatpush1.msra.mxu1 %v777_v33  ;;  %v749_v31 = vld [vmem:[#allocation5 + $0x600] sm:$0xff]  ;;  %v748_v32 = vld [vmem:[#allocation5 + $0x5f8] sm:$0xff] }
 0x125   :  { %971 = vmatprep.subr.mxu0 %v712_v34  ;;  %1042 = vmatprep.subr.mxu1 %v776_v35  ;;  %v812_v33 = vld [vmem:[#allocation5 + $0x7f8] sm:$0xff]  ;;  %v747_v34 = vld [vmem:[#allocation5 + $0x5f0] sm:$0xff] }
 0x126   :  { %972 = vmatpush1.msra.mxu0 %v711_v36  ;;  %1043 = vmatpush1.msra.mxu1 %v775_v37  ;;  %v811_v35 = vld [vmem:[#allocation5 + $0x7f0] sm:$0xff]  ;;  %v746_v36 = vld [vmem:[#allocation5 + $0x5e8] sm:$0xff] }
 0x127   :  { %973 = vmatprep.subr.mxu0 %v710_v38  ;;  %1044 = vmatprep.subr.mxu1 %v774_v39  ;;  %v810_v37 = vld [vmem:[#allocation5 + $0x7e8] sm:$0xff]  ;;  %v745_v38 = vld [vmem:[#allocation5 + $0x5e0] sm:$0xff] }
 0x128   :  { %974 = vmatpush1.msra.mxu0 %v709_v40  ;;  %1045 = vmatpush1.msra.mxu1 %v773_v41  ;;  %v809_v39 = vld [vmem:[#allocation5 + $0x7e0] sm:$0xff]  ;;  %v744_v40 = vld [vmem:[#allocation5 + $0x5d8] sm:$0xff] }
 0x129   :  { %975 = vmatprep.subr.mxu0 %v708_v42  ;;  %1046 = vmatprep.subr.mxu1 %v772_v43  ;;  %v808_v41 = vld [vmem:[#allocation5 + $0x7d8] sm:$0xff]  ;;  %v743_v42 = vld [vmem:[#allocation5 + $0x5d0] sm:$0xff] }
 0x12a   :  { %976 = vmatpush1.msra.mxu0 %v707_v44  ;;  %1047 = vmatpush1.msra.mxu1 %v771_v45  ;;  %v807_v43 = vld [vmem:[#allocation5 + $0x7d0] sm:$0xff]  ;;  %v742_v44 = vld [vmem:[#allocation5 + $0x5c8] sm:$0xff] }
 0x12b   :  { %977 = vmatprep.subr.mxu0 %v706_v46  ;;  %1048 = vmatprep.subr.mxu1 %v770_v47  ;;  %v806_v45 = vld [vmem:[#allocation5 + $0x7c8] sm:$0xff]  ;;  %v741_v46 = vld [vmem:[#allocation5 + $0x5c0] sm:$0xff] }
 0x12c   :  { %978 = vmatpush1.msra.mxu0 %v705_v48  ;;  %1049 = vmatpush1.msra.mxu1 %v769_v49  ;;  %v805_v47 = vld [vmem:[#allocation5 + $0x7c0] sm:$0xff]  ;;  %v740_v48 = vld [vmem:[#allocation5 + $0x5b8] sm:$0xff] }
 0x12d   :  { %979 = vmatprep.subr.mxu0 %v704_v50  ;;  %1050 = vmatprep.subr.mxu1 %v768_v51  ;;  %v804_v49 = vld [vmem:[#allocation5 + $0x7b8] sm:$0xff]  ;;  %v739_v50 = vld [vmem:[#allocation5 + $0x5b0] sm:$0xff] }
 0x12e   :  { %980 = vmatpush1.msra.mxu0 %v703_v52  ;;  %1051 = vmatpush1.msra.mxu1 %v767_v53  ;;  %v803_v51 = vld [vmem:[#allocation5 + $0x7b0] sm:$0xff]  ;;  %v738_v52 = vld [vmem:[#allocation5 + $0x5a8] sm:$0xff] }
 0x12f   :  { %981 = vmatprep.subr.mxu0 %v702_v54  ;;  %1052 = vmatprep.subr.mxu1 %v766_v55  ;;  %v802_v53 = vld [vmem:[#allocation5 + $0x7a8] sm:$0xff]  ;;  %v737_v54 = vld [vmem:[#allocation5 + $0x5a0] sm:$0xff] }
 0x130   :  { %982 = vmatpush1.msra.mxu0 %v701_v56  ;;  %1053 = vmatpush1.msra.mxu1 %v765_v57  ;;  %v801_v55 = vld [vmem:[#allocation5 + $0x7a0] sm:$0xff]  ;;  %v736_v56 = vld [vmem:[#allocation5 + $0x598] sm:$0xff] }
 0x131   :  { %983 = vmatprep.subr.mxu0 %v700_v58  ;;  %1054 = vmatprep.subr.mxu1 %v764_v59  ;;  %v800_v57 = vld [vmem:[#allocation5 + $0x798] sm:$0xff]  ;;  %v735_v58 = vld [vmem:[#allocation5 + $0x590] sm:$0xff] }
 0x132   :  { %984 = vmatpush1.msra.mxu0 %v699_v60  ;;  %1055 = vmatpush1.msra.mxu1 %v763_v61  ;;  %v799_v59 = vld [vmem:[#allocation5 + $0x790] sm:$0xff]  ;;  %v734_v60 = vld [vmem:[#allocation5 + $0x588] sm:$0xff] }
 0x133   :  { %985 = vmatprep.subr.mxu0 %v698_v62  ;;  %1056 = vmatprep.subr.mxu1 %v762_v63  ;;  %v798_v61 = vld [vmem:[#allocation5 + $0x788] sm:$0xff]  ;;  %v733_v62 = vld [vmem:[#allocation5 + $0x580] sm:$0xff] }
 0x134   :  { %986 = vmatpush1.msra.mxu0 %v697_v1  ;;  %1057 = vmatpush1.msra.mxu1 %v761_v3  ;;  %v797_v63 = vld [vmem:[#allocation5 + $0x780] sm:$0xff]  ;;  %v732_v1 = vld [vmem:[#allocation5 + $0x578] sm:$0xff] }
 0x135   :  { %987 = vmatprep.subr.mxu0 %v696_v4  ;;  %1058 = vmatprep.subr.mxu1 %v760_v5  ;;  %v796_v3 = vld [vmem:[#allocation5 + $0x778] sm:$0xff]  ;;  %v247_v4 = vsub.s32 5, %v2078_v8  ;;  %v731_v5 = vld [vmem:[#allocation5 + $0x570] sm:$0xff] }
 0x136   :  { %988 = vmatpush1.msra.mxu0 %v695_v6  ;;  %1059 = vmatpush1.msra.mxu1 %v759_v7  ;;  %v795_v6 = vld [vmem:[#allocation5 + $0x770] sm:$0xff] }
 0x137   :  { %989 = vmatprep.subr.mxu0 %v694_v14  ;;  %1060 = vmatprep.subr.mxu1 %v758_v15  ;;  %v730_v14 = vld [vmem:[#allocation5 + $0x568] sm:$0xff] }
 0x138   :  { %990 = vmatpush1.msra.mxu0 %v693_v16  ;;  %1061 = vmatpush1.msra.mxu1 %v757_v17  ;;  %v794_v15 = vld [vmem:[#allocation5 + $0x768] sm:$0xff]  ;;  %v729_v16 = vld [vmem:[#allocation5 + $0x560] sm:$0xff] }
 0x139   :  { %991 = vmatprep.subr.mxu0 %v692_v0  ;;  %1062 = vmatprep.subr.mxu1 %v756_v18  ;;  %v793_v17 = vld [vmem:[#allocation5 + $0x760] sm:$0xff]  ;;  %v255_v0 = vsub.s32 7, %v2078_v8  ;;  %v728_v18 = vld [vmem:[#allocation5 + $0x558] sm:$0xff] }
 0x13a   :  { %992 = vmatpush1.msra.mxu0 %v691_v19  ;;  %1063 = vmatpush1.msra.mxu1 %v755_v2  ;;  %v473_v7 = vpop.f32.mrf.mxu0  ;;  %v792_v19 = vld [vmem:[#allocation5 + $0x758] sm:$0xff]  ;;  %v248_v2 = vrot.slane %v2087_v11, %v247_v4 }
 0x13b   :  { %993 = vmatprep.subr.mxu0 %v690_v20  ;;  %1064 = vmatprep.subr.mxu1 %v754_v21  ;;  %v251_v20 = vsub.s32 6, %v2078_v8  ;;  %v1166_v4 = vld [vmem:[#allocation7 + $0x1b8] sm:$0xff] }
 0x13c   :  { %994 = vmatpush1.msra.mxu0 %v689_v22  ;;  %1065 = vmatpush1.msra.mxu1 %v753_v23  ;;  %v544_v21 = vpop.f32.mrf.mxu1  ;;  %v727_v22 = vld [vmem:[#allocation5 + $0x550] sm:$0xff] }
 0x13d   :  { %995 = vmatprep.subr.mxu0 %v688_v24  ;;  %1066 = vmatprep.subr.mxu1 %v752_v25  ;;  %v791_v23 = vld [vmem:[#allocation5 + $0x750] sm:$0xff]  ;;  %v475_v24 = vpop.f32.mrf.mxu0  ;;  %v243_v25 = vsub.s32 4, %v2078_v8 }
 0x13e   :  { %996 = vmatpush1.msra.mxu0 %v687_v26  ;;  %1067 = vmatpush1.msra.mxu1 %v751_v27  ;;  %v726_v26 = vld [vmem:[#allocation5 + $0x548] sm:$0xff]  ;;  %v1721_v8 = vld [vmem:[%s2241_s9 + $0xf0] sm:$0xff] }
 0x13f   :  { %997 = vmatprep.subr.mxu0 %v686_v28  ;;  %1068 = vmatprep.subr.mxu1 %v750_v29  ;;  %v790_v27 = vld [vmem:[#allocation5 + $0x748] sm:$0xff]  ;;  %v725_v28 = vld [vmem:[#allocation5 + $0x540] sm:$0xff] }
 0x140   :  { %998 = vmatpush1.msra.mxu0 %v685_v30  ;;  %1069 = vmatpush1.msra.mxu1 %v749_v31  ;;  %v789_v29 = vld [vmem:[#allocation5 + $0x740] sm:$0xff]  ;;  %v256_v30 = vrot.slane %v2087_v11, %v255_v0  ;;  %v476_v31 = vadd.f32 %v475_v24, %v248_v2  ;;  %v1158_v0 = vld [vmem:[#allocation7 + $0x178] sm:$0xff]  ;;  %v1152_v2 = vld [vmem:[#allocation7 + $0x148] sm:$0xff] }
 0x141   :  { %999 = vmatprep.subr.mxu0 %v748_v32  ;;  %1070 = vmatprep.subr.mxu1 %v812_v33  ;;  %v252_v32 = vrot.slane %v2087_v11, %v251_v20  ;;  %v724_v33 = vld [vmem:[#allocation5 + $0x538] sm:$0xff] }
 0x142   :  { %1000 = vmatpush2.msra.mxu0 %v747_v34  ;;  %1071 = vmatpush2.msra.mxu1 %v811_v35  ;;  %v788_v34 = vld [vmem:[#allocation5 + $0x738] sm:$0xff]  ;;  %v546_v35 = vpop.f32.mrf.mxu1 }
 0x143   :  { %1001 = vmatprep.subr.mxu0 %v746_v36  ;;  %1072 = vmatprep.subr.mxu1 %v810_v37  ;;  %v723_v36 = vld [vmem:[#allocation5 + $0x530] sm:$0xff]  ;;  %v1154_v20 = vld [vmem:[#allocation7 + $0x158] sm:$0xff] }
 0x144   :  { %1002 = vmatpush2.msra.mxu0 %v745_v38  ;;  %1073 = vmatpush2.msra.mxu1 %v809_v39  ;;  %v787_v37 = vld [vmem:[#allocation5 + $0x730] sm:$0xff]  ;;  %v244_v38 = vrot.slane %v2087_v11, %v243_v25  ;;  %v722_v39 = vld [vmem:[#allocation5 + $0x528] sm:$0xff]  ;;  %v1150_v24 = vld [vmem:[#allocation7 + $0x138] sm:$0xff] }
 0x145   :  { %1003 = vmatprep.subr.mxu0 %v744_v40  ;;  %1074 = vmatprep.subr.mxu1 %v808_v41  ;;  %v786_v40 = vld [vmem:[#allocation5 + $0x728] sm:$0xff]  ;;  %v547_v41 = vadd.f32 %v546_v35, %v256_v30  ;;  %v783_v11 = vld [vmem:[#allocation5 + $0x710] sm:$0xff]  ;;  %v1147_v25 = vld [vmem:[#allocation7 + $0x120] sm:$0xff] }
 0x146   :  { %1004 = vmatpush2.msra.mxu0 %v743_v42  ;;  %1075 = vmatpush2.msra.mxu1 %v807_v43  ;;  %v721_v42 = vld [vmem:[#allocation5 + $0x520] sm:$0xff]  ;;  %v1145_v30 = vld [vmem:[#allocation7 + $0x110] sm:$0xff]  ;;  %v1136_v35 = vld [vmem:[#allocation7 + $0xc8] sm:$0xff] }
 0x147   :  { %1005 = vmatprep.subr.mxu0 %v742_v44  ;;  %1076 = vmatprep.subr.mxu1 %v806_v45  ;;  %v785_v43 = vld [vmem:[#allocation5 + $0x720] sm:$0xff]  ;;  %v554_v44 = vmax.f32 %v476_v31, 0.0  ;;  %v545_v45 = vadd.f32 %v544_v21, %v252_v32  ;;  %v1140_v31 = vld [vmem:[#allocation7 + $0xe8] sm:$0xff]  ;;  %v1142_v32 = vld [vmem:[#allocation7 + $0xf8] sm:$0xff] }
 0x148   :  { %1006 = vmatpush2.msra.mxu0 %v741_v46  ;;  %1077 = vmatpush2.msra.mxu1 %v805_v47  ;;  %v720_v46 = vld [vmem:[#allocation5 + $0x518] sm:$0xff]  ;;  %v1151_v21 = vld [vmem:[#allocation7 + $0x140] sm:$0xff] }
 0x149   :  { %1007 = vmatprep.subr.mxu0 %v740_v48  ;;  %1078 = vmatprep.subr.mxu1 %v804_v49  ;;  %v784_v47 = vld [vmem:[#allocation5 + $0x718] sm:$0xff]  ;;  %v719_v48 = vld [vmem:[#allocation5 + $0x510] sm:$0xff]  ;;  %v474_v49 = vadd.f32 %v473_v7, %v244_v38  ;;  %v1160_v7 = vld [vmem:[#allocation7 + $0x188] sm:$0xff] }
 0x14a   :  { %1008 = vmatpush2.msra.mxu0 %v739_v50  ;;  %1079 = vmatpush2.msra.mxu1 %v803_v51  ;;  %v718_v50 = vld [vmem:[#allocation5 + $0x508] sm:$0xff]  ;;  %v556_v51 = vmax.f32 %v547_v41, 0.0  ;;  %v1137_v38 = vld [vmem:[#allocation7 + $0xd0] sm:$0xff]  ;;  %v1131_v41 = vld [vmem:[#allocation7 + $0xa0] sm:$0xff] }
 0x14b   :  { %1009 = vmatprep.subr.mxu0 %v738_v52  ;;  %1080 = vmatprep.subr.mxu1 %v802_v53  ;;  %v782_v52 = vld [vmem:[#allocation5 + $0x708] sm:$0xff]  ;;  %v717_v53 = vld [vmem:[#allocation5 + $0x500] sm:$0xff] }
 0x14c   :  { %1010 = vmatpush2.msra.mxu0 %v737_v54  ;;  %1081 = vmatpush2.msra.mxu1 %v801_v55  ;;  %v555_v54 = vmax.f32 %v545_v45, 0.0  ;;  %v781_v55 = vld [vmem:[#allocation5 + $0x700] sm:$0xff] }
 0x14d   :  { %1011 = vmatprep.subr.mxu0 %v736_v56  ;;  %1082 = vmatprep.subr.mxu1 %v800_v57  ;;  %v553_v56 = vmax.f32 %v474_v49, 0.0  ;;  %v1172_v57 = vld [vmem:[#allocation7 + $0x1e8] sm:$0xff]  ;;  %v1127_v45 = vld [vmem:[#allocation7 + $0x80] sm:$0xff] }
 0x14e   :  { %1012 = vmatpush2.msra.mxu0 %v735_v58  ;;  %1083 = vmatpush2.msra.mxu1 %v799_v59  ;;  %v1174_v58 = vld [vmem:[#allocation7 + $0x1f8] sm:$0xff]  ;;  %v1171_v59 = vld [vmem:[#allocation7 + $0x1e0] sm:$0xff] }
 0x14f   :  { %1013 = vmatprep.subr.mxu0 %v734_v60  ;;  %1084 = vmatprep.subr.mxu1 %v798_v61  ;;  %v1173_v60 = vld [vmem:[#allocation7 + $0x1f0] sm:$0xff]  ;;  %v1168_v61 = vld [vmem:[#allocation7 + $0x1c8] sm:$0xff]  ;;  %v1123_v49 = vld [vmem:[#allocation7 + $0x60] sm:$0xff] }
 0x150   :  { %1014 = vmatpush2.msra.mxu0 %v733_v62  ;;  %1085 = vmatpush2.msra.mxu1 %v797_v63  ;;  %v1170_v62 = vld [vmem:[#allocation7 + $0x1d8] sm:$0xff]  ;;  %v1167_v63 = vld [vmem:[#allocation7 + $0x1c0] sm:$0xff] }
 0x151   :  { %1015 = vmatprep.subr.mxu0 %v732_v1  ;;  %1086 = vmatprep.subr.mxu1 %v796_v3  ;;  %v1169_v1 = vld [vmem:[#allocation7 + $0x1d0] sm:$0xff]  ;;  %v1164_v3 = vld [vmem:[#allocation7 + $0x1a8] sm:$0xff] }
 0x152   :  { %1016 = vmatpush2.msra.mxu0 %v731_v5  ;;  %1087 = vmatpush2.msra.mxu1 %v795_v6  ;;  %v1163_v5 = vld [vmem:[#allocation7 + $0x1a0] sm:$0xff]  ;;  %v1165_v6 = vld [vmem:[#allocation7 + $0x1b0] sm:$0xff] }
 0x153   :  { %1017 = vmatprep.subr.mxu0 %v730_v14  ;;  %1088 = vmatprep.subr.mxu1 %v794_v15  ;;  %v1162_v14 = vld [vmem:[#allocation7 + $0x198] sm:$0xff]  ;;  %v1159_v15 = vld [vmem:[#allocation7 + $0x180] sm:$0xff] }
 0x154   :  { %1018 = vmatpush2.msra.mxu0 %v729_v16  ;;  %1089 = vmatpush2.msra.mxu1 %v793_v17  ;;  %v1161_v16 = vld [vmem:[#allocation7 + $0x190] sm:$0xff]  ;;  %v1156_v17 = vld [vmem:[#allocation7 + $0x168] sm:$0xff] }
 0x155   :  { %1019 = vmatprep.subr.mxu0 %v728_v18  ;;  %1090 = vmatprep.subr.mxu1 %v792_v19  ;;  %v1155_v18 = vld [vmem:[#allocation7 + $0x160] sm:$0xff]  ;;  %v1157_v19 = vld [vmem:[#allocation7 + $0x170] sm:$0xff] }
 0x156   :  { %1020 = vmatpush2.msra.mxu0 %v727_v22  ;;  %1091 = vmatpush2.msra.mxu1 %v791_v23  ;;  %v1153_v22 = vld [vmem:[#allocation7 + $0x150] sm:$0xff]  ;;  %v1148_v23 = vld [vmem:[#allocation7 + $0x128] sm:$0xff] }
 0x157   :  { %1021 = vmatprep.subr.mxu0 %v726_v26  ;;  %1092 = vmatprep.subr.mxu1 %v790_v27  ;;  %v1149_v26 = vld [vmem:[#allocation7 + $0x130] sm:$0xff]  ;;  %v1144_v27 = vld [vmem:[#allocation7 + $0x108] sm:$0xff] }
 0x158   :  { %1022 = vmatpush2.msra.mxu0 %v725_v28  ;;  %1093 = vmatpush2.msra.mxu1 %v789_v29  ;;  %v1146_v28 = vld [vmem:[#allocation7 + $0x118] sm:$0xff]  ;;  %v1143_v29 = vld [vmem:[#allocation7 + $0x100] sm:$0xff] }
 0x159   :  { %1023 = vmatprep.subr.mxu0 %v724_v33  ;;  %1094 = vmatprep.subr.mxu1 %v788_v34  ;;  %v1139_v33 = vld [vmem:[#allocation7 + $0xe0] sm:$0xff]  ;;  %v1141_v34 = vld [vmem:[#allocation7 + $0xf0] sm:$0xff] }
 0x15a   :  { %1024 = vmatpush2.msra.mxu0 %v723_v36  ;;  %1095 = vmatpush2.msra.mxu1 %v787_v37  ;;  %v1138_v36 = vld [vmem:[#allocation7 + $0xd8] sm:$0xff]  ;;  %v1135_v37 = vld [vmem:[#allocation7 + $0xc0] sm:$0xff] }
 0x15b   :  { %1025 = vmatprep.subr.mxu0 %v722_v39  ;;  %1096 = vmatprep.subr.mxu1 %v786_v40  ;;  %v1132_v39 = vld [vmem:[#allocation7 + $0xa8] sm:$0xff]  ;;  %v1134_v40 = vld [vmem:[#allocation7 + $0xb8] sm:$0xff] }
 0x15c   :  { %1026 = vmatpush2.msra.mxu0 %v721_v42  ;;  %1097 = vmatpush2.msra.mxu1 %v785_v43  ;;  %v1133_v42 = vld [vmem:[#allocation7 + $0xb0] sm:$0xff]  ;;  %v1128_v43 = vld [vmem:[#allocation7 + $0x88] sm:$0xff] }
 0x15d   :  { %1027 = vmatprep.subr.mxu0 %v720_v46  ;;  %1098 = vmatprep.subr.mxu1 %v784_v47  ;;  %v1129_v46 = vld [vmem:[#allocation7 + $0x90] sm:$0xff]  ;;  %v1124_v47 = vld [vmem:[#allocation7 + $0x68] sm:$0xff] }
 0x15e   :  { %1028 = vmatpush2.msra.mxu0 %v719_v48  ;;  %1031 = vmatprep.mubr.f32.mxu0 %v554_v44  ;;  %v1130_v44 = vld [vmem:[#allocation7 + $0x98] sm:$0xff] }
 0x15f   :  { %1099 = vmatpush2.msra.mxu1 %v783_v11  ;;  %1029 = vmatprep.subr.mxu0 %v718_v50  ;;  %v1126_v48 = vld [vmem:[#allocation7 + $0x78] sm:$0xff]  ;;  %v1125_v11 = vld [vmem:[#allocation7 + $0x70] sm:$0xff]  ;;  %v1120_v50 = vld [vmem:[#allocation7 + $0x48] sm:$0xff] }
 0x160   :  { %1100 = vmatprep.subr.mxu1 %v782_v52  ;;  %1030 = vmatpush2.msra.mxu0 %v717_v53  ;;  %v1119_v52 = vld [vmem:[#allocation7 + $0x40] sm:$0xff]  ;;  %v1121_v53 = vld [vmem:[#allocation7 + $0x50] sm:$0xff] }
 0x161   :  { %1101 = vmatpush2.msra.mxu1 %v781_v55  ;;  %1102 = vmatprep.mubr.f32.mxu1 %v556_v51  ;;  %v1122_v51 = vld [vmem:[#allocation7 + $0x58] sm:$0xff] }
 0x162   :  { %1032 = vmatmul.mubr.f32.vlgmr.msra.gmra.mxu0 %v553_v56  ;;  %1103 = vmatmul.mubr.f32.vlgmr.msra.gmra.mxu1 %v555_v54  ;;  %v1116_v54 = vld [vmem:[#allocation7 + $0x28] sm:$0xff]  ;;  %v1118_v55 = vld [vmem:[#allocation7 + $0x38] sm:$0xff]  ;;  %v1115_v56 = vld [vmem:[#allocation7 + $0x20] sm:$0xff] }
 0x163   :  { %1261 = vmatprep.subr.mxu0 %v1172_v57  ;;  %1332 = vmatprep.subr.mxu1 %v1174_v58  ;;  %v1117_v57 = vld [vmem:[#allocation7 + $0x30] sm:$0xff]  ;;  %v1112_v58 = vld [vmem:[#allocation7 + $0x8] sm:$0xff] }
 0x164   :  { %1262 = vmatpush1.msra.mxu0 %v1171_v59  ;;  %1333 = vmatpush1.msra.mxu1 %v1173_v60  ;;  %v1114_v59 = vld [vmem:[#allocation7 + $0x18] sm:$0xff]  ;;  %v1111_v60 = vld [vmem:[#allocation7] sm:$0xff] }
 0x165   :  { %1263 = vmatprep.subr.mxu0 %v1168_v61  ;;  %1334 = vmatprep.subr.mxu1 %v1170_v62  ;;  %v1113_v61 = vld [vmem:[#allocation7 + $0x10] sm:$0xff]  ;;  %v1236_v62 = vld [vmem:[#allocation7 + $0x3e8] sm:$0xff] }
 0x166   :  { %1264 = vmatpush1.msra.mxu0 %v1167_v63  ;;  %1335 = vmatpush1.msra.mxu1 %v1169_v1  ;;  %v1238_v63 = vld [vmem:[#allocation7 + $0x3f8] sm:$0xff]  ;;  %v1235_v1 = vld [vmem:[#allocation7 + $0x3e0] sm:$0xff] }
 0x167   :  { %1265 = vmatprep.subr.mxu0 %v1164_v3  ;;  %1336 = vmatprep.subr.mxu1 %v1166_v4  ;;  %v1237_v3 = vld [vmem:[#allocation7 + $0x3f0] sm:$0xff]  ;;  %v1232_v4 = vld [vmem:[#allocation7 + $0x3c8] sm:$0xff] }
 0x168   :  { %1266 = vmatpush1.msra.mxu0 %v1163_v5  ;;  %1337 = vmatpush1.msra.mxu1 %v1165_v6  ;;  %v1234_v5 = vld [vmem:[#allocation7 + $0x3d8] sm:$0xff]  ;;  %v1231_v6 = vld [vmem:[#allocation7 + $0x3c0] sm:$0xff] }
 0x169   :  { %1267 = vmatprep.subr.mxu0 %v1160_v7  ;;  %1338 = vmatprep.subr.mxu1 %v1162_v14  ;;  %v1233_v7 = vld [vmem:[#allocation7 + $0x3d0] sm:$0xff]  ;;  %v1228_v14 = vld [vmem:[#allocation7 + $0x3a8] sm:$0xff] }
 0x16a   :  { %1268 = vmatpush1.msra.mxu0 %v1159_v15  ;;  %1339 = vmatpush1.msra.mxu1 %v1161_v16  ;;  %v1230_v15 = vld [vmem:[#allocation7 + $0x3b8] sm:$0xff]  ;;  %v1227_v16 = vld [vmem:[#allocation7 + $0x3a0] sm:$0xff] }
 0x16b   :  { %1269 = vmatprep.subr.mxu0 %v1156_v17  ;;  %1340 = vmatprep.subr.mxu1 %v1158_v0  ;;  %v1229_v17 = vld [vmem:[#allocation7 + $0x3b0] sm:$0xff]  ;;  %v1224_v0 = vld [vmem:[#allocation7 + $0x388] sm:$0xff] }
 0x16c   :  { %1270 = vmatpush1.msra.mxu0 %v1155_v18  ;;  %1341 = vmatpush1.msra.mxu1 %v1157_v19  ;;  %v1226_v18 = vld [vmem:[#allocation7 + $0x398] sm:$0xff]  ;;  %v1223_v19 = vld [vmem:[#allocation7 + $0x380] sm:$0xff] }
 0x16d   :  { %1271 = vmatprep.subr.mxu0 %v1152_v2  ;;  %1342 = vmatprep.subr.mxu1 %v1154_v20  ;;  %v1225_v2 = vld [vmem:[#allocation7 + $0x390] sm:$0xff]  ;;  %v1220_v20 = vld [vmem:[#allocation7 + $0x368] sm:$0xff] }
 0x16e   :  { %1272 = vmatpush1.msra.mxu0 %v1151_v21  ;;  %1343 = vmatpush1.msra.mxu1 %v1153_v22  ;;  %v1222_v21 = vld [vmem:[#allocation7 + $0x378] sm:$0xff]  ;;  %v1219_v22 = vld [vmem:[#allocation7 + $0x360] sm:$0xff] }
 0x16f   :  { %1273 = vmatprep.subr.mxu0 %v1148_v23  ;;  %1344 = vmatprep.subr.mxu1 %v1150_v24  ;;  %v1221_v23 = vld [vmem:[#allocation7 + $0x370] sm:$0xff]  ;;  %v1216_v24 = vld [vmem:[#allocation7 + $0x348] sm:$0xff] }
 0x170   :  { %1274 = vmatpush1.msra.mxu0 %v1147_v25  ;;  %1345 = vmatpush1.msra.mxu1 %v1149_v26  ;;  %v1218_v25 = vld [vmem:[#allocation7 + $0x358] sm:$0xff]  ;;  %v1215_v26 = vld [vmem:[#allocation7 + $0x340] sm:$0xff] }
 0x171   :  { %1275 = vmatprep.subr.mxu0 %v1144_v27  ;;  %1346 = vmatprep.subr.mxu1 %v1146_v28  ;;  %v1217_v27 = vld [vmem:[#allocation7 + $0x350] sm:$0xff]  ;;  %v1212_v28 = vld [vmem:[#allocation7 + $0x328] sm:$0xff] }
 0x172   :  { %1276 = vmatpush1.msra.mxu0 %v1143_v29  ;;  %1347 = vmatpush1.msra.mxu1 %v1145_v30  ;;  %v1214_v29 = vld [vmem:[#allocation7 + $0x338] sm:$0xff]  ;;  %v1211_v30 = vld [vmem:[#allocation7 + $0x320] sm:$0xff] }
 0x173   :  { %1277 = vmatprep.subr.mxu0 %v1140_v31  ;;  %1348 = vmatprep.subr.mxu1 %v1142_v32  ;;  %v1213_v31 = vld [vmem:[#allocation7 + $0x330] sm:$0xff]  ;;  %v1208_v32 = vld [vmem:[#allocation7 + $0x308] sm:$0xff] }
 0x174   :  { %1278 = vmatpush1.msra.mxu0 %v1139_v33  ;;  %1349 = vmatpush1.msra.mxu1 %v1141_v34  ;;  %v1210_v33 = vld [vmem:[#allocation7 + $0x318] sm:$0xff]  ;;  %v1207_v34 = vld [vmem:[#allocation7 + $0x300] sm:$0xff] }
 0x175   :  { %1279 = vmatprep.subr.mxu0 %v1136_v35  ;;  %1350 = vmatprep.subr.mxu1 %v1138_v36  ;;  %v1209_v35 = vld [vmem:[#allocation7 + $0x310] sm:$0xff]  ;;  %v1204_v36 = vld [vmem:[#allocation7 + $0x2e8] sm:$0xff] }
 0x176   :  { %1280 = vmatpush1.msra.mxu0 %v1135_v37  ;;  %1351 = vmatpush1.msra.mxu1 %v1137_v38  ;;  %v1206_v37 = vld [vmem:[#allocation7 + $0x2f8] sm:$0xff]  ;;  %v1203_v38 = vld [vmem:[#allocation7 + $0x2e0] sm:$0xff] }
 0x177   :  { %1281 = vmatprep.subr.mxu0 %v1132_v39  ;;  %1352 = vmatprep.subr.mxu1 %v1134_v40  ;;  %v1205_v39 = vld [vmem:[#allocation7 + $0x2f0] sm:$0xff]  ;;  %v1200_v40 = vld [vmem:[#allocation7 + $0x2c8] sm:$0xff] }
 0x178   :  { %1282 = vmatpush1.msra.mxu0 %v1131_v41  ;;  %1353 = vmatpush1.msra.mxu1 %v1133_v42  ;;  %v1202_v41 = vld [vmem:[#allocation7 + $0x2d8] sm:$0xff]  ;;  %v1199_v42 = vld [vmem:[#allocation7 + $0x2c0] sm:$0xff] }
 0x179   :  { %1283 = vmatprep.subr.mxu0 %v1128_v43  ;;  %1354 = vmatprep.subr.mxu1 %v1130_v44  ;;  %v1201_v43 = vld [vmem:[#allocation7 + $0x2d0] sm:$0xff]  ;;  %v1196_v44 = vld [vmem:[#allocation7 + $0x2a8] sm:$0xff] }
 0x17a   :  { %1284 = vmatpush1.msra.mxu0 %v1127_v45  ;;  %1355 = vmatpush1.msra.mxu1 %v1129_v46  ;;  %v1198_v45 = vld [vmem:[#allocation7 + $0x2b8] sm:$0xff]  ;;  %v1195_v46 = vld [vmem:[#allocation7 + $0x2a0] sm:$0xff] }
 0x17b   :  { %1285 = vmatprep.subr.mxu0 %v1124_v47  ;;  %1356 = vmatprep.subr.mxu1 %v1126_v48  ;;  %v1197_v47 = vld [vmem:[#allocation7 + $0x2b0] sm:$0xff]  ;;  %v1192_v48 = vld [vmem:[#allocation7 + $0x288] sm:$0xff] }
 0x17c   :  { %1286 = vmatpush1.msra.mxu0 %v1123_v49  ;;  %1357 = vmatpush1.msra.mxu1 %v1125_v11  ;;  %v1194_v49 = vld [vmem:[#allocation7 + $0x298] sm:$0xff]  ;;  %v1191_v11 = vld [vmem:[#allocation7 + $0x280] sm:$0xff] }
 0x17d   :  { %1287 = vmatprep.subr.mxu0 %v1120_v50  ;;  %1358 = vmatprep.subr.mxu1 %v1122_v51  ;;  %v1193_v50 = vld [vmem:[#allocation7 + $0x290] sm:$0xff]  ;;  %v1188_v51 = vld [vmem:[#allocation7 + $0x268] sm:$0xff] }
 0x17e   :  { %1288 = vmatpush1.msra.mxu0 %v1119_v52  ;;  %1359 = vmatpush1.msra.mxu1 %v1121_v53  ;;  %v1190_v52 = vld [vmem:[#allocation7 + $0x278] sm:$0xff]  ;;  %v1187_v53 = vld [vmem:[#allocation7 + $0x260] sm:$0xff] }
 0x17f   :  { %1289 = vmatprep.subr.mxu0 %v1116_v54  ;;  %1360 = vmatprep.subr.mxu1 %v1118_v55  ;;  %v1189_v54 = vld [vmem:[#allocation7 + $0x270] sm:$0xff]  ;;  %v1184_v55 = vld [vmem:[#allocation7 + $0x248] sm:$0xff] }
 0x180   :  { %1290 = vmatpush1.msra.mxu0 %v1115_v56  ;;  %1361 = vmatpush1.msra.mxu1 %v1117_v57  ;;  %v1186_v56 = vld [vmem:[#allocation7 + $0x258] sm:$0xff]  ;;  %v1183_v57 = vld [vmem:[#allocation7 + $0x240] sm:$0xff] }
 0x181   :  { %1291 = vmatprep.subr.mxu0 %v1112_v58  ;;  %1362 = vmatprep.subr.mxu1 %v1114_v59  ;;  %v1185_v58 = vld [vmem:[#allocation7 + $0x250] sm:$0xff]  ;;  %v1180_v59 = vld [vmem:[#allocation7 + $0x228] sm:$0xff] }
 0x182   :  { %1292 = vmatpush1.msra.mxu0 %v1111_v60  ;;  %1363 = vmatpush1.msra.mxu1 %v1113_v61  ;;  %v1182_v60 = vld [vmem:[#allocation7 + $0x238] sm:$0xff]  ;;  %v1179_v61 = vld [vmem:[#allocation7 + $0x220] sm:$0xff] }
 0x183   :  { %1293 = vmatprep.subr.mxu0 %v1236_v62  ;;  %1364 = vmatprep.subr.mxu1 %v1238_v63  ;;  %v1181_v62 = vld [vmem:[#allocation7 + $0x230] sm:$0xff]  ;;  %v1176_v63 = vld [vmem:[#allocation7 + $0x208] sm:$0xff] }
 0x184   :  { %1294 = vmatpush2.msra.mxu0 %v1235_v1  ;;  %1365 = vmatpush2.msra.mxu1 %v1237_v3  ;;  %v1178_v1 = vld [vmem:[#allocation7 + $0x218] sm:$0xff]  ;;  %v1175_v3 = vld [vmem:[#allocation7 + $0x200] sm:$0xff] }
 0x185   :  { %1295 = vmatprep.subr.mxu0 %v1232_v4  ;;  %1366 = vmatprep.subr.mxu1 %v1234_v5  ;;  %v1177_v4 = vld [vmem:[#allocation7 + $0x210] sm:$0xff]  ;;  %v1438_v5 = vld [vmem:[#allocation8 + $0xf8] sm:$0xff] }
 0x186   :  { %1296 = vmatpush2.msra.mxu0 %v1231_v6  ;;  %1367 = vmatpush2.msra.mxu1 %v1233_v7  ;;  %v1502_v6 = vld [vmem:[#allocation8 + $0x2f8] sm:$0xff]  ;;  %v813_v7 = vld [vmem:[%s2236_s4] sm:$0x3] }
 0x187   :  { %1297 = vmatprep.subr.mxu0 %v1228_v14  ;;  %1368 = vmatprep.subr.mxu1 %v1230_v15  ;;  %v818_v15 = vrot.slane %v813_v7, %v2082_v10 }
 0x188   :  { %1298 = vmatpush2.msra.mxu0 %v1227_v16  ;;  %1369 = vmatpush2.msra.mxu1 %v1229_v17  ;;  %v822_v16 = vrot.slane %v813_v7, %v2090_v12  ;;  %v1418_v7 = vld [vmem:[#allocation8 + $0x58] sm:$0xff] }
 0x189   :  { %1299 = vmatprep.subr.mxu0 %v1224_v0  ;;  %1370 = vmatprep.subr.mxu1 %v1226_v18 }
 0x18a   :  { %1300 = vmatpush2.msra.mxu0 %v1223_v19  ;;  %1371 = vmatpush2.msra.mxu1 %v1225_v2 }
 0x18b   :  { %1301 = vmatprep.subr.mxu0 %v1220_v20  ;;  %1372 = vmatprep.subr.mxu1 %v1222_v21 }
 0x18c   :  { %1302 = vmatpush2.msra.mxu0 %v1219_v22  ;;  %1373 = vmatpush2.msra.mxu1 %v1221_v23 }
 0x18d   :  { %1303 = vmatprep.subr.mxu0 %v1216_v24  ;;  %1374 = vmatprep.subr.mxu1 %v1218_v25 }
 0x18e   :  { %1304 = vmatpush2.msra.mxu0 %v1215_v26  ;;  %1375 = vmatpush2.msra.mxu1 %v1217_v27 }
 0x18f   :  { %1305 = vmatprep.subr.mxu0 %v1212_v28  ;;  %1376 = vmatprep.subr.mxu1 %v1214_v29 }
 0x190   :  { %1306 = vmatpush2.msra.mxu0 %v1211_v30  ;;  %1377 = vmatpush2.msra.mxu1 %v1213_v31 }
 0x191   :  { %1307 = vmatprep.subr.mxu0 %v1208_v32  ;;  %1378 = vmatprep.subr.mxu1 %v1210_v33  ;;  %v1437_v32 = vld [vmem:[#allocation8 + $0xf0] sm:$0xff] }
 0x192   :  { %1308 = vmatpush2.msra.mxu0 %v1207_v34  ;;  %1379 = vmatpush2.msra.mxu1 %v1209_v35  ;;  %v1501_v33 = vld [vmem:[#allocation8 + $0x2f0] sm:$0xff]  ;;  %v1436_v34 = vld [vmem:[#allocation8 + $0xe8] sm:$0xff] }
 0x193   :  { %1309 = vmatprep.subr.mxu0 %v1204_v36  ;;  %1380 = vmatprep.subr.mxu1 %v1206_v37  ;;  %v1500_v35 = vld [vmem:[#allocation8 + $0x2e8] sm:$0xff]  ;;  %v1435_v36 = vld [vmem:[#allocation8 + $0xe0] sm:$0xff] }
 0x194   :  { %1310 = vmatpush2.msra.mxu0 %v1203_v38  ;;  %1381 = vmatpush2.msra.mxu1 %v1205_v39  ;;  %v1499_v37 = vld [vmem:[#allocation8 + $0x2e0] sm:$0xff]  ;;  %v1434_v38 = vld [vmem:[#allocation8 + $0xd8] sm:$0xff] }
 0x195   :  { %1311 = vmatprep.subr.mxu0 %v1200_v40  ;;  %1382 = vmatprep.subr.mxu1 %v1202_v41  ;;  %v1498_v39 = vld [vmem:[#allocation8 + $0x2d8] sm:$0xff]  ;;  %v1433_v40 = vld [vmem:[#allocation8 + $0xd0] sm:$0xff] }
 0x196   :  { %1312 = vmatpush2.msra.mxu0 %v1199_v42  ;;  %1383 = vmatpush2.msra.mxu1 %v1201_v43  ;;  %v1497_v41 = vld [vmem:[#allocation8 + $0x2d0] sm:$0xff]  ;;  %v1432_v42 = vld [vmem:[#allocation8 + $0xc8] sm:$0xff] }
 0x197   :  { %1313 = vmatprep.subr.mxu0 %v1196_v44  ;;  %1384 = vmatprep.subr.mxu1 %v1198_v45  ;;  %v1496_v43 = vld [vmem:[#allocation8 + $0x2c8] sm:$0xff]  ;;  %v1431_v44 = vld [vmem:[#allocation8 + $0xc0] sm:$0xff] }
 0x198   :  { %1314 = vmatpush2.msra.mxu0 %v1195_v46  ;;  %1385 = vmatpush2.msra.mxu1 %v1197_v47  ;;  %v1495_v45 = vld [vmem:[#allocation8 + $0x2c0] sm:$0xff]  ;;  %v1430_v46 = vld [vmem:[#allocation8 + $0xb8] sm:$0xff] }
 0x199   :  { %1315 = vmatprep.subr.mxu0 %v1192_v48  ;;  %1386 = vmatprep.subr.mxu1 %v1194_v49  ;;  %v1494_v47 = vld [vmem:[#allocation8 + $0x2b8] sm:$0xff]  ;;  %v1429_v48 = vld [vmem:[#allocation8 + $0xb0] sm:$0xff] }
 0x19a   :  { %1316 = vmatpush2.msra.mxu0 %v1191_v11  ;;  %1387 = vmatpush2.msra.mxu1 %v1193_v50  ;;  %v1493_v49 = vld [vmem:[#allocation8 + $0x2b0] sm:$0xff]  ;;  %v1428_v11 = vld [vmem:[#allocation8 + $0xa8] sm:$0xff] }
 0x19b   :  { %1317 = vmatprep.subr.mxu0 %v1188_v51  ;;  %1388 = vmatprep.subr.mxu1 %v1190_v52  ;;  %v1492_v50 = vld [vmem:[#allocation8 + $0x2a8] sm:$0xff]  ;;  %v1427_v51 = vld [vmem:[#allocation8 + $0xa0] sm:$0xff] }
 0x19c   :  { %1318 = vmatpush2.msra.mxu0 %v1187_v53  ;;  %1389 = vmatpush2.msra.mxu1 %v1189_v54  ;;  %v1491_v52 = vld [vmem:[#allocation8 + $0x2a0] sm:$0xff]  ;;  %v1426_v53 = vld [vmem:[#allocation8 + $0x98] sm:$0xff] }
 0x19d   :  { %1319 = vmatprep.subr.mxu0 %v1184_v55  ;;  %1390 = vmatprep.subr.mxu1 %v1186_v56  ;;  %v1490_v54 = vld [vmem:[#allocation8 + $0x298] sm:$0xff]  ;;  %v1425_v55 = vld [vmem:[#allocation8 + $0x90] sm:$0xff] }
 0x19e   :  { %1320 = vmatpush2.msra.mxu0 %v1183_v57  ;;  %1391 = vmatpush2.msra.mxu1 %v1185_v58  ;;  %v1489_v56 = vld [vmem:[#allocation8 + $0x290] sm:$0xff]  ;;  %v1424_v57 = vld [vmem:[#allocation8 + $0x88] sm:$0xff] }
 0x19f   :  { %1321 = vmatprep.subr.mxu0 %v1180_v59  ;;  %1392 = vmatprep.subr.mxu1 %v1182_v60  ;;  %v1488_v58 = vld [vmem:[#allocation8 + $0x288] sm:$0xff]  ;;  %v1423_v59 = vld [vmem:[#allocation8 + $0x80] sm:$0xff] }
 0x1a0   :  { %1322 = vmatpush2.msra.mxu0 %v1179_v61  ;;  %1393 = vmatpush2.msra.mxu1 %v1181_v62  ;;  %v1487_v60 = vld [vmem:[#allocation8 + $0x280] sm:$0xff]  ;;  %v1422_v61 = vld [vmem:[#allocation8 + $0x78] sm:$0xff] }
 0x1a1   :  { %1323 = vmatprep.subr.mxu0 %v1176_v63  ;;  %1394 = vmatprep.subr.mxu1 %v1178_v1  ;;  %v1486_v62 = vld [vmem:[#allocation8 + $0x278] sm:$0xff]  ;;  %v1421_v63 = vld [vmem:[#allocation8 + $0x70] sm:$0xff] }
 0x1a2   :  { %1324 = vmatpush2.msra.mxu0 %v1175_v3  ;;  %1395 = vmatpush2.msra.mxu1 %v1177_v4  ;;  %v1485_v1 = vld [vmem:[#allocation8 + $0x270] sm:$0xff]  ;;  %v1420_v3 = vld [vmem:[#allocation8 + $0x68] sm:$0xff] }
 0x1a3   :  { %1547 = vmatprep.subr.mxu0 %v1438_v5  ;;  %1618 = vmatprep.subr.mxu1 %v1502_v6  ;;  %v1484_v4 = vld [vmem:[#allocation8 + $0x268] sm:$0xff]  ;;  %v1419_v5 = vld [vmem:[#allocation8 + $0x60] sm:$0xff] }
 0x1a4   :  { %v1483_v6 = vld [vmem:[#allocation8 + $0x260] sm:$0xff] }
 0x1e1   :  { %v891_v14 = vpop.f32.mrf.mxu0  ;;  %v962_v17 = vpop.f32.mrf.mxu1 }
 0x1e2   :  { %v892_v18 = vadd.f32 %v891_v14, %v818_v15  ;;  %v1482_v14 = vld [vmem:[#allocation8 + $0x258] sm:$0xff]  ;;  %v1417_v15 = vld [vmem:[#allocation8 + $0x50] sm:$0xff] }
 0x1e3   :  { %v893_v0 = vpop.f32.mrf.mxu0  ;;  %v964_v2 = vpop.f32.mrf.mxu1 }
 0x1e4   :  { %v894_v19 = vadd.f32 %v893_v0, %v822_v16  ;;  %v963_v20 = vadd.f32 %v962_v17, %v892_v18  ;;  %v1481_v16 = vld [vmem:[#allocation8 + $0x250] sm:$0xff]  ;;  %v1416_v17 = vld [vmem:[#allocation8 + $0x48] sm:$0xff]  ;;  %v1415_v18 = vld [vmem:[#allocation8 + $0x40] sm:$0xff] }
 0x1e5   :  { %v1480_v0 = vld [vmem:[#allocation8 + $0x248] sm:$0xff] }
 0x1e6   :  { %v965_v23 = vadd.f32 %v964_v2, %v894_v19  ;;  %v1479_v19 = vld [vmem:[#allocation8 + $0x240] sm:$0xff]  ;;  %v1414_v2 = vld [vmem:[#allocation8 + $0x38] sm:$0xff] }
 0x222   :  { %v1033_v21 = vpop.f32.mrf.mxu0  ;;  %v1104_v22 = vpop.f32.mrf.mxu1 }
 0x223   :  { %v1034_v24 = vadd.f32 %v1033_v21, %v963_v20  ;;  %v1478_v20 = vld [vmem:[#allocation8 + $0x238] sm:$0xff]  ;;  %v1413_v21 = vld [vmem:[#allocation8 + $0x30] sm:$0xff] }
 0x224   :  { %v1035_v25 = vpop.f32.mrf.mxu0  ;;  %v1106_v28 = vpop.f32.mrf.mxu1 }
 0x225   :  { %v1036_v26 = vadd.f32 %v1035_v25, %v965_v23  ;;  %v1105_v27 = vadd.f32 %v1104_v22, %v1034_v24  ;;  %v1477_v22 = vld [vmem:[#allocation8 + $0x230] sm:$0xff]  ;;  %v1412_v23 = vld [vmem:[#allocation8 + $0x28] sm:$0xff]  ;;  %v1411_v25 = vld [vmem:[#allocation8 + $0x20] sm:$0xff] }
 0x226   :  { %v1476_v24 = vld [vmem:[#allocation8 + $0x228] sm:$0xff] }
 0x227   :  { %v1107_v29 = vadd.f32 %v1106_v28, %v1036_v26  ;;  %v1109_v31 = vmax.f32 %v1105_v27, 0.0  ;;  %v1475_v26 = vld [vmem:[#allocation8 + $0x220] sm:$0xff]  ;;  %v1410_v27 = vld [vmem:[#allocation8 + $0x18] sm:$0xff] }
 0x228   :  { %v1474_v28 = vld [vmem:[#allocation8 + $0x218] sm:$0xff] }
 0x229   :  { %v1110_v30 = vmax.f32 %v1107_v29, 0.0  ;;  %v1409_v29 = vld [vmem:[#allocation8 + $0x10] sm:$0xff] }
 0x22b   :  { %1325 = vmatprep.mubr.f32.mxu0 %v1110_v30  ;;  %1396 = vmatprep.mubr.f32.mxu1 %v1110_v30  ;;  %v1473_v30 = vld [vmem:[#allocation8 + $0x210] sm:$0xff] }
 0x22c   :  { %1326 = vmatmul.mubr.f32.vlgmr.msra.gmra.mxu0 %v1109_v31  ;;  %1397 = vmatmul.mubr.f32.vlgmr.msra.gmra.mxu1 %v1109_v31  ;;  %v1408_v31 = vld [vmem:[#allocation8 + $0x8] sm:$0xff] }
 0x22d   :  { %1548 = vmatpush1.msra.mxu0 %v1437_v32  ;;  %1619 = vmatpush1.msra.mxu1 %v1501_v33  ;;  %v1472_v32 = vld [vmem:[#allocation8 + $0x208] sm:$0xff]  ;;  %v1407_v33 = vld [vmem:[#allocation8] sm:$0xff] }
 0x22e   :  { %1549 = vmatprep.subr.mxu0 %v1436_v34  ;;  %1620 = vmatprep.subr.mxu1 %v1500_v35  ;;  %v1471_v34 = vld [vmem:[#allocation8 + $0x200] sm:$0xff]  ;;  %v1470_v35 = vld [vmem:[#allocation8 + $0x1f8] sm:$0xff] }
 0x22f   :  { %1550 = vmatpush1.msra.mxu0 %v1435_v36  ;;  %1621 = vmatpush1.msra.mxu1 %v1499_v37  ;;  %v1534_v36 = vld [vmem:[#allocation8 + $0x3f8] sm:$0xff]  ;;  %v1469_v37 = vld [vmem:[#allocation8 + $0x1f0] sm:$0xff] }
 0x230   :  { %1551 = vmatprep.subr.mxu0 %v1434_v38  ;;  %1622 = vmatprep.subr.mxu1 %v1498_v39  ;;  %v1533_v38 = vld [vmem:[#allocation8 + $0x3f0] sm:$0xff]  ;;  %v1468_v39 = vld [vmem:[#allocation8 + $0x1e8] sm:$0xff] }
 0x231   :  { %1552 = vmatpush1.msra.mxu0 %v1433_v40  ;;  %1623 = vmatpush1.msra.mxu1 %v1497_v41  ;;  %v1532_v40 = vld [vmem:[#allocation8 + $0x3e8] sm:$0xff]  ;;  %v1467_v41 = vld [vmem:[#allocation8 + $0x1e0] sm:$0xff] }
 0x232   :  { %1553 = vmatprep.subr.mxu0 %v1432_v42  ;;  %1624 = vmatprep.subr.mxu1 %v1496_v43  ;;  %v1531_v42 = vld [vmem:[#allocation8 + $0x3e0] sm:$0xff]  ;;  %v1466_v43 = vld [vmem:[#allocation8 + $0x1d8] sm:$0xff] }
 0x233   :  { %1554 = vmatpush1.msra.mxu0 %v1431_v44  ;;  %1625 = vmatpush1.msra.mxu1 %v1495_v45  ;;  %v1530_v44 = vld [vmem:[#allocation8 + $0x3d8] sm:$0xff]  ;;  %v1465_v45 = vld [vmem:[#allocation8 + $0x1d0] sm:$0xff] }
 0x234   :  { %1555 = vmatprep.subr.mxu0 %v1430_v46  ;;  %1626 = vmatprep.subr.mxu1 %v1494_v47  ;;  %v1529_v46 = vld [vmem:[#allocation8 + $0x3d0] sm:$0xff]  ;;  %v1464_v47 = vld [vmem:[#allocation8 + $0x1c8] sm:$0xff] }
 0x235   :  { %1556 = vmatpush1.msra.mxu0 %v1429_v48  ;;  %1627 = vmatpush1.msra.mxu1 %v1493_v49  ;;  %v1528_v48 = vld [vmem:[#allocation8 + $0x3c8] sm:$0xff]  ;;  %v1463_v49 = vld [vmem:[#allocation8 + $0x1c0] sm:$0xff] }
 0x236   :  { %1557 = vmatprep.subr.mxu0 %v1428_v11  ;;  %1628 = vmatprep.subr.mxu1 %v1492_v50  ;;  %v1527_v11 = vld [vmem:[#allocation8 + $0x3c0] sm:$0xff]  ;;  %v1462_v50 = vld [vmem:[#allocation8 + $0x1b8] sm:$0xff] }
 0x237   :  { %1558 = vmatpush1.msra.mxu0 %v1427_v51  ;;  %1629 = vmatpush1.msra.mxu1 %v1491_v52  ;;  %v1526_v51 = vld [vmem:[#allocation8 + $0x3b8] sm:$0xff]  ;;  %v1461_v52 = vld [vmem:[#allocation8 + $0x1b0] sm:$0xff] }
 0x238   :  { %1559 = vmatprep.subr.mxu0 %v1426_v53  ;;  %1630 = vmatprep.subr.mxu1 %v1490_v54  ;;  %v1525_v53 = vld [vmem:[#allocation8 + $0x3b0] sm:$0xff]  ;;  %v1460_v54 = vld [vmem:[#allocation8 + $0x1a8] sm:$0xff] }
 0x239   :  { %1560 = vmatpush1.msra.mxu0 %v1425_v55  ;;  %1631 = vmatpush1.msra.mxu1 %v1489_v56  ;;  %v1524_v55 = vld [vmem:[#allocation8 + $0x3a8] sm:$0xff]  ;;  %v1459_v56 = vld [vmem:[#allocation8 + $0x1a0] sm:$0xff] }
 0x23a   :  { %1561 = vmatprep.subr.mxu0 %v1424_v57  ;;  %1632 = vmatprep.subr.mxu1 %v1488_v58  ;;  %v1523_v57 = vld [vmem:[#allocation8 + $0x3a0] sm:$0xff]  ;;  %v1458_v58 = vld [vmem:[#allocation8 + $0x198] sm:$0xff] }
 0x23b   :  { %1562 = vmatpush1.msra.mxu0 %v1423_v59  ;;  %1633 = vmatpush1.msra.mxu1 %v1487_v60  ;;  %v1522_v59 = vld [vmem:[#allocation8 + $0x398] sm:$0xff]  ;;  %v1457_v60 = vld [vmem:[#allocation8 + $0x190] sm:$0xff] }
 0x23c   :  { %1563 = vmatprep.subr.mxu0 %v1422_v61  ;;  %1634 = vmatprep.subr.mxu1 %v1486_v62  ;;  %v1521_v61 = vld [vmem:[#allocation8 + $0x390] sm:$0xff]  ;;  %v1456_v62 = vld [vmem:[#allocation8 + $0x188] sm:$0xff] }
 0x23d   :  { %1564 = vmatpush1.msra.mxu0 %v1421_v63  ;;  %1635 = vmatpush1.msra.mxu1 %v1485_v1  ;;  %v1520_v63 = vld [vmem:[#allocation8 + $0x388] sm:$0xff]  ;;  %v1455_v1 = vld [vmem:[#allocation8 + $0x180] sm:$0xff] }
 0x23e   :  { %1565 = vmatprep.subr.mxu0 %v1420_v3  ;;  %1636 = vmatprep.subr.mxu1 %v1484_v4  ;;  %v1519_v3 = vld [vmem:[#allocation8 + $0x380] sm:$0xff]  ;;  %v1454_v4 = vld [vmem:[#allocation8 + $0x178] sm:$0xff] }
 0x23f   :  { %1566 = vmatpush1.msra.mxu0 %v1419_v5  ;;  %1637 = vmatpush1.msra.mxu1 %v1483_v6  ;;  %v1518_v5 = vld [vmem:[#allocation8 + $0x378] sm:$0xff]  ;;  %v1453_v6 = vld [vmem:[#allocation8 + $0x170] sm:$0xff] }
 0x240   :  { %1567 = vmatprep.subr.mxu0 %v1418_v7  ;;  %1638 = vmatprep.subr.mxu1 %v1482_v14  ;;  %v1517_v7 = vld [vmem:[#allocation8 + $0x370] sm:$0xff]  ;;  %v1452_v14 = vld [vmem:[#allocation8 + $0x168] sm:$0xff] }
 0x241   :  { %1568 = vmatpush1.msra.mxu0 %v1417_v15  ;;  %1639 = vmatpush1.msra.mxu1 %v1481_v16  ;;  %v1516_v15 = vld [vmem:[#allocation8 + $0x368] sm:$0xff]  ;;  %v1451_v16 = vld [vmem:[#allocation8 + $0x160] sm:$0xff] }
 0x242   :  { %1569 = vmatprep.subr.mxu0 %v1416_v17  ;;  %1640 = vmatprep.subr.mxu1 %v1480_v0  ;;  %v1515_v17 = vld [vmem:[#allocation8 + $0x360] sm:$0xff]  ;;  %v1450_v0 = vld [vmem:[#allocation8 + $0x158] sm:$0xff] }
 0x243   :  { %1570 = vmatpush1.msra.mxu0 %v1415_v18  ;;  %1641 = vmatpush1.msra.mxu1 %v1479_v19  ;;  %v1514_v18 = vld [vmem:[#allocation8 + $0x358] sm:$0xff]  ;;  %v1449_v19 = vld [vmem:[#allocation8 + $0x150] sm:$0xff] }
 0x244   :  { %1571 = vmatprep.subr.mxu0 %v1414_v2  ;;  %1642 = vmatprep.subr.mxu1 %v1478_v20  ;;  %v1513_v2 = vld [vmem:[#allocation8 + $0x350] sm:$0xff]  ;;  %v1448_v20 = vld [vmem:[#allocation8 + $0x148] sm:$0xff] }
 0x245   :  { %1572 = vmatpush1.msra.mxu0 %v1413_v21  ;;  %1643 = vmatpush1.msra.mxu1 %v1477_v22  ;;  %v1512_v21 = vld [vmem:[#allocation8 + $0x348] sm:$0xff]  ;;  %v1447_v22 = vld [vmem:[#allocation8 + $0x140] sm:$0xff] }
 0x246   :  { %1573 = vmatprep.subr.mxu0 %v1412_v23  ;;  %1644 = vmatprep.subr.mxu1 %v1476_v24  ;;  %v1511_v23 = vld [vmem:[#allocation8 + $0x340] sm:$0xff]  ;;  %v1446_v24 = vld [vmem:[#allocation8 + $0x138] sm:$0xff] }
 0x247   :  { %1574 = vmatpush1.msra.mxu0 %v1411_v25  ;;  %1645 = vmatpush1.msra.mxu1 %v1475_v26  ;;  %v1510_v25 = vld [vmem:[#allocation8 + $0x338] sm:$0xff]  ;;  %v1445_v26 = vld [vmem:[#allocation8 + $0x130] sm:$0xff] }
 0x248   :  { %1575 = vmatprep.subr.mxu0 %v1410_v27  ;;  %1646 = vmatprep.subr.mxu1 %v1474_v28  ;;  %v1509_v27 = vld [vmem:[#allocation8 + $0x330] sm:$0xff]  ;;  %v1444_v28 = vld [vmem:[#allocation8 + $0x128] sm:$0xff] }
 0x249   :  { %1576 = vmatpush1.msra.mxu0 %v1409_v29  ;;  %1647 = vmatpush1.msra.mxu1 %v1473_v30  ;;  %v1508_v29 = vld [vmem:[#allocation8 + $0x328] sm:$0xff]  ;;  %v1443_v30 = vld [vmem:[#allocation8 + $0x120] sm:$0xff] }
 0x24a   :  { %1577 = vmatprep.subr.mxu0 %v1408_v31  ;;  %1648 = vmatprep.subr.mxu1 %v1472_v32  ;;  %v1507_v31 = vld [vmem:[#allocation8 + $0x320] sm:$0xff]  ;;  %v1442_v32 = vld [vmem:[#allocation8 + $0x118] sm:$0xff] }
 0x24b   :  { %1578 = vmatpush1.msra.mxu0 %v1407_v33  ;;  %1649 = vmatpush1.msra.mxu1 %v1471_v34  ;;  %v1506_v33 = vld [vmem:[#allocation8 + $0x318] sm:$0xff]  ;;  %v1441_v34 = vld [vmem:[#allocation8 + $0x110] sm:$0xff] }
 0x24c   :  { %1579 = vmatprep.subr.mxu0 %v1470_v35  ;;  %1650 = vmatprep.subr.mxu1 %v1534_v36  ;;  %v1505_v35 = vld [vmem:[#allocation8 + $0x310] sm:$0xff]  ;;  %v1440_v36 = vld [vmem:[#allocation8 + $0x108] sm:$0xff] }
 0x24d   :  { %1580 = vmatpush2.msra.mxu0 %v1469_v37  ;;  %1651 = vmatpush2.msra.mxu1 %v1533_v38  ;;  %v1504_v37 = vld [vmem:[#allocation8 + $0x308] sm:$0xff]  ;;  %v1439_v38 = vld [vmem:[#allocation8 + $0x100] sm:$0xff] }
 0x24e   :  { %1581 = vmatprep.subr.mxu0 %v1468_v39  ;;  %1652 = vmatprep.subr.mxu1 %v1532_v40  ;;  %v1503_v39 = vld [vmem:[#allocation8 + $0x300] sm:$0xff]  ;;  %v1722_v40 = vld [vmem:[%s2241_s9 + $0xf8] sm:$0xff] }
 0x24f   :  { %1582 = vmatpush2.msra.mxu0 %v1467_v41  ;;  %1653 = vmatpush2.msra.mxu1 %v1531_v42  ;;  %v1239_v41 = vld [vmem:[%s2238_s6] sm:$0xf] }
 0x250   :  { %1583 = vmatprep.subr.mxu0 %v1466_v43  ;;  %1654 = vmatprep.subr.mxu1 %v1530_v44  ;;  %v1244_v42 = vrot.slane %v1239_v41, %v2082_v10  ;;  %v1252_v43 = vrot.slane %v1239_v41, %v235_v9  ;;  %v1248_v44 = vrot.slane %v1239_v41, %v2090_v12  ;;  %v1706_v9 = vld [vmem:[%s2241_s9 + $0x78] sm:$0xff] }
 0x251   :  { %1584 = vmatpush2.msra.mxu0 %v1465_v45  ;;  %1655 = vmatpush2.msra.mxu1 %v1529_v46  ;;  %v1256_v45 = vrot.slane %v1239_v41, %v239_v13  ;;  %v1705_v13 = vld [vmem:[%s2241_s9 + $0x70] sm:$0xff]  ;;  %v1819_v41 = vld [vmem:[%s2242_s10] ss:$0 sm:$0xff] }
 0x252   :  { %1585 = vmatprep.subr.mxu0 %v1464_v47  ;;  %1656 = vmatprep.subr.mxu1 %v1528_v48 }
 0x253   :  { %1586 = vmatpush2.msra.mxu0 %v1463_v49  ;;  %1657 = vmatpush2.msra.mxu1 %v1527_v11 }
 0x254   :  { %1587 = vmatprep.subr.mxu0 %v1462_v50  ;;  %1658 = vmatprep.subr.mxu1 %v1526_v51 }
 0x255   :  { %1588 = vmatpush2.msra.mxu0 %v1461_v52  ;;  %1659 = vmatpush2.msra.mxu1 %v1525_v53 }
 0x256   :  { %1589 = vmatprep.subr.mxu0 %v1460_v54  ;;  %1660 = vmatprep.subr.mxu1 %v1524_v55 }
 0x257   :  { %1590 = vmatpush2.msra.mxu0 %v1459_v56  ;;  %1661 = vmatpush2.msra.mxu1 %v1523_v57  ;;  %v1720_v57 = vld [vmem:[%s2241_s9 + $0xe8] sm:$0xff] }
 0x258   :  { %1591 = vmatprep.subr.mxu0 %v1458_v58  ;;  %1662 = vmatprep.subr.mxu1 %v1522_v59  ;;  %v1704_v58 = vld [vmem:[%s2241_s9 + $0x68] sm:$0xff]  ;;  %v1719_v59 = vld [vmem:[%s2241_s9 + $0xe0] sm:$0xff] }
 0x259   :  { %1592 = vmatpush2.msra.mxu0 %v1457_v60  ;;  %1663 = vmatpush2.msra.mxu1 %v1521_v61  ;;  %v1703_v60 = vld [vmem:[%s2241_s9 + $0x60] sm:$0xff]  ;;  %v1718_v61 = vld [vmem:[%s2241_s9 + $0xd8] sm:$0xff] }
 0x25a   :  { %1593 = vmatprep.subr.mxu0 %v1456_v62  ;;  %1664 = vmatprep.subr.mxu1 %v1520_v63  ;;  %v1702_v62 = vld [vmem:[%s2241_s9 + $0x58] sm:$0xff]  ;;  %v1717_v63 = vld [vmem:[%s2241_s9 + $0xd0] sm:$0xff] }
 0x25b   :  { %1594 = vmatpush2.msra.mxu0 %v1455_v1  ;;  %1665 = vmatpush2.msra.mxu1 %v1519_v3  ;;  %v1701_v1 = vld [vmem:[%s2241_s9 + $0x50] sm:$0xff]  ;;  %v1716_v3 = vld [vmem:[%s2241_s9 + $0xc8] sm:$0xff] }
 0x25c   :  { %1595 = vmatprep.subr.mxu0 %v1454_v4  ;;  %1666 = vmatprep.subr.mxu1 %v1518_v5  ;;  %v1700_v4 = vld [vmem:[%s2241_s9 + $0x48] sm:$0xff]  ;;  %v1715_v5 = vld [vmem:[%s2241_s9 + $0xc0] sm:$0xff] }
 0x25d   :  { %1596 = vmatpush2.msra.mxu0 %v1453_v6  ;;  %1667 = vmatpush2.msra.mxu1 %v1517_v7  ;;  %v1699_v6 = vld [vmem:[%s2241_s9 + $0x40] sm:$0xff]  ;;  %v1714_v7 = vld [vmem:[%s2241_s9 + $0xb8] sm:$0xff] }
 0x25e   :  { %1597 = vmatprep.subr.mxu0 %v1452_v14  ;;  %1668 = vmatprep.subr.mxu1 %v1516_v15  ;;  %v1698_v14 = vld [vmem:[%s2241_s9 + $0x38] sm:$0xff]  ;;  %v1713_v15 = vld [vmem:[%s2241_s9 + $0xb0] sm:$0xff] }
 0x25f   :  { %1598 = vmatpush2.msra.mxu0 %v1451_v16  ;;  %1669 = vmatpush2.msra.mxu1 %v1515_v17  ;;  %v1697_v16 = vld [vmem:[%s2241_s9 + $0x30] sm:$0xff]  ;;  %v1712_v17 = vld [vmem:[%s2241_s9 + $0xa8] sm:$0xff] }
 0x260   :  { %1599 = vmatprep.subr.mxu0 %v1450_v0  ;;  %1670 = vmatprep.subr.mxu1 %v1514_v18  ;;  %v1696_v0 = vld [vmem:[%s2241_s9 + $0x28] sm:$0xff]  ;;  %v1711_v18 = vld [vmem:[%s2241_s9 + $0xa0] sm:$0xff] }
 0x261   :  { %1600 = vmatpush2.msra.mxu0 %v1449_v19  ;;  %1671 = vmatpush2.msra.mxu1 %v1513_v2  ;;  %v1695_v19 = vld [vmem:[%s2241_s9 + $0x20] sm:$0xff]  ;;  %v1710_v2 = vld [vmem:[%s2241_s9 + $0x98] sm:$0xff] }
 0x262   :  { %1601 = vmatprep.subr.mxu0 %v1448_v20  ;;  %1672 = vmatprep.subr.mxu1 %v1512_v21  ;;  %v1694_v20 = vld [vmem:[%s2241_s9 + $0x18] sm:$0xff]  ;;  %v1709_v21 = vld [vmem:[%s2241_s9 + $0x90] sm:$0xff] }
 0x263   :  { %1602 = vmatpush2.msra.mxu0 %v1447_v22  ;;  %1673 = vmatpush2.msra.mxu1 %v1511_v23  ;;  %v1693_v22 = vld [vmem:[%s2241_s9 + $0x10] sm:$0xff]  ;;  %v1708_v23 = vld [vmem:[%s2241_s9 + $0x88] sm:$0xff] }
 0x264   :  { %1603 = vmatprep.subr.mxu0 %v1446_v24  ;;  %1674 = vmatprep.subr.mxu1 %v1510_v25  ;;  %v1692_v24 = vld [vmem:[%s2241_s9 + $0x8] sm:$0xff]  ;;  %v1707_v25 = vld [vmem:[%s2241_s9 + $0x80] sm:$0xff] }
 0x265   :  { %1604 = vmatpush2.msra.mxu0 %v1445_v26  ;;  %1675 = vmatpush2.msra.mxu1 %v1509_v27  ;;  %v1691_v26 = vld [vmem:[%s2241_s9] sm:$0xff] }
 0x266   :  { %1605 = vmatprep.subr.mxu0 %v1444_v28  ;;  %1676 = vmatprep.subr.mxu1 %v1508_v29  ;;  %v1535_v27 = vld [vmem:[%s2240_s8] sm:$0x3]  ;;  %s1986_s8 = smov [#allocation10]  }
 0x267   :  { %1606 = vmatpush2.msra.mxu0 %v1443_v30  ;;  %1677 = vmatpush2.msra.mxu1 %v1507_v31  ;;  %v1540_v28 = vrot.slane %v1535_v27, %v2082_v10  ;;  %v1544_v29 = vrot.slane %v1535_v27, %v2090_v12  ;;  %s1808_s17 = sshll.u32 %s1986_s8, 4  ;;  %s1809_s17 = int_to_ptr.vmem [resolvable:$true] %s1808_s17 }
 0x268   :  { %1607 = vmatprep.subr.mxu0 %v1442_v32  ;;  %1678 = vmatprep.subr.mxu1 %v1506_v33  ;;  %s1947_s18 = scalar_lea.vmem %s1809_s17, 128  ;;  %p1952_p7 = scmp.lt.s32.totalorder %s1809_s17, %s1809_s17 }
 0x269   :  { %1608 = vmatpush2.msra.mxu0 %v1441_v34  ;;  %1679 = vmatpush2.msra.mxu1 %v1505_v35  ;;  %p1948_p6 = scmp.ne.s32.totalorder %s1809_s17, %s1947_s18  ;;  %p1953_p8 = scmp.lt.s32.totalorder %s1947_s18, %s1947_s18 }
 0x26a   :  { %1609 = vmatprep.subr.mxu0 %v1440_v36  ;;  %1680 = vmatprep.subr.mxu1 %v1504_v37 }
 0x26b   :  { %1610 = vmatpush2.msra.mxu0 %v1439_v38  ;;  %1681 = vmatpush2.msra.mxu1 %v1503_v39  ;;  %p1954_p9 = por %p1953_p8, %p1952_p7 }
 0x26c   :  { %1820 = vmatprep.subr.mxu0 %v1722_v40 }
 0x26d   :  { %p1955_p10 = pnand %p1954_p9, %p1948_p6 }
 0x2ec   :  { %v1327_v46 = vpop.f32.mrf.mxu0  ;;  %v1398_v47 = vpop.f32.mrf.mxu1 }
 0x2ed   :  { %v1328_v48 = vadd.f32 %v1327_v46, %v1244_v42  ;;  %v1399_v49 = vadd.f32 %v1398_v47, %v1252_v43 }
 0x2ee   :  { %v1329_v11 = vpop.f32.mrf.mxu0  ;;  %v1400_v50 = vpop.f32.mrf.mxu1 }
 0x2ef   :  { %v1330_v51 = vadd.f32 %v1329_v11, %v1248_v44  ;;  %v1401_v52 = vadd.f32 %v1400_v50, %v1256_v45  ;;  %v1403_v55 = vmax.f32 %v1328_v48, 0.0  ;;  %v1405_v56 = vmax.f32 %v1399_v49, 0.0 }
 0x2f1   :  { %v1404_v53 = vmax.f32 %v1330_v51, 0.0  ;;  %v1406_v54 = vmax.f32 %v1401_v52, 0.0 }
 0x2f3   :  { %1611 = vmatprep.mubr.f32.mxu0 %v1404_v53  ;;  %1682 = vmatprep.mubr.f32.mxu1 %v1406_v54 }
 0x2f4   :  { %1612 = vmatmul.mubr.f32.vlgmr.msra.gmra.mxu0 %v1403_v55  ;;  %1683 = vmatmul.mubr.f32.vlgmr.msra.gmra.mxu1 %v1405_v56 }
 0x2f5   :  { %1821 = vmatpush3.msra.mxu0 %v1706_v9 }
 0x2f6   :  { %1822 = vmatprep.subr.mxu0 %v1721_v8 }
 0x2f7   :  { %1823 = vmatpush3.msra.mxu0 %v1705_v13 }
 0x2f8   :  { %1824 = vmatprep.subr.mxu0 %v1720_v57 }
 0x2f9   :  { %1825 = vmatpush3.msra.mxu0 %v1704_v58 }
 0x2fa   :  { %1826 = vmatprep.subr.mxu0 %v1719_v59 }
 0x2fb   :  { %1827 = vmatpush3.msra.mxu0 %v1703_v60 }
 0x2fc   :  { %1828 = vmatprep.subr.mxu0 %v1718_v61 }
 0x2fd   :  { %1829 = vmatpush3.msra.mxu0 %v1702_v62 }
 0x2fe   :  { %1830 = vmatprep.subr.mxu0 %v1717_v63 }
 0x2ff   :  { %1831 = vmatpush3.msra.mxu0 %v1701_v1 }
 0x300   :  { %1832 = vmatprep.subr.mxu0 %v1716_v3 }
 0x301   :  { %1833 = vmatpush3.msra.mxu0 %v1700_v4 }
 0x302   :  { %1834 = vmatprep.subr.mxu0 %v1715_v5 }
 0x303   :  { %1835 = vmatpush3.msra.mxu0 %v1699_v6 }
 0x304   :  { %1836 = vmatprep.subr.mxu0 %v1714_v7 }
 0x305   :  { %1837 = vmatpush3.msra.mxu0 %v1698_v14 }
 0x306   :  { %1838 = vmatprep.subr.mxu0 %v1713_v15 }
 0x307   :  { %1839 = vmatpush3.msra.mxu0 %v1697_v16 }
 0x308   :  { %1840 = vmatprep.subr.mxu0 %v1712_v17 }
 0x309   :  { %1841 = vmatpush3.msra.mxu0 %v1696_v0 }
 0x30a   :  { %1842 = vmatprep.subr.mxu0 %v1711_v18 }
 0x30b   :  { %1843 = vmatpush3.msra.mxu0 %v1695_v19 }
 0x30c   :  { %1844 = vmatprep.subr.mxu0 %v1710_v2 }
 0x30d   :  { %1845 = vmatpush3.msra.mxu0 %v1694_v20 }
 0x30e   :  { %1846 = vmatprep.subr.mxu0 %v1709_v21 }
 0x30f   :  { %1847 = vmatpush3.msra.mxu0 %v1693_v22 }
 0x310   :  { %1848 = vmatprep.subr.mxu0 %v1708_v23 }
 0x311   :  { %1849 = vmatpush3.msra.mxu0 %v1692_v24 }
 0x312   :  { %1850 = vmatprep.subr.mxu0 %v1707_v25 }
 0x313   :  { %1851 = vmatpush3.msra.mxu0 %v1691_v26 }
 0x3b4   :  { %v1613_v30 = vpop.f32.mrf.mxu0  ;;  %v1684_v31 = vpop.f32.mrf.mxu1 }
 0x3b5   :  { %v1614_v32 = vadd.f32 %v1613_v30, %v1540_v28 }
 0x3b6   :  { %v1615_v33 = vpop.f32.mrf.mxu0  ;;  %v1686_v36 = vpop.f32.mrf.mxu1 }
 0x3b7   :  { %v1616_v34 = vadd.f32 %v1615_v33, %v1544_v29  ;;  %v1685_v35 = vadd.f32 %v1684_v31, %v1614_v32 }
 0x3b9   :  { %v1687_v37 = vadd.f32 %v1686_v36, %v1616_v34  ;;  %v1689_v39 = vmax.f32 %v1685_v35, 0.0 }
 0x3bb   :  { %v1690_v38 = vmax.f32 %v1687_v37, 0.0 }
 0x3bd   :  { %1794 = vmatprep.mubr.f32.mxu0 %v1690_v38 }
 0x3be   :  { %1795 = vmatmul.mubr.f32.vlgmr.msra.gmra.mxu0 %v1689_v39 }
 0x47e   :  { %v1852_v40 = vpop.f32.mrf.mxu0 }
 0x480   :  { %v1853_v10 = vpop.f32.mrf.mxu0 }
 0x481   :  { %v1854_v12 = vadd.f32 %v1853_v10, %v1852_v40 }
 0x483   :  { %v1797_v42 = vadd.f32 %v1854_v12, %v1819_v41 }
 0x485   :  { %1801 = vst.msk [vmem:[#allocation10] sm:$0xff] %vm1800_vm0, %v1797_v42 }
 0x486   :  { %1958 = shalt.err (!%p1955_p10)
}
 0x487   :  { %1811 = dma.vmem_to_hbm [thread:$0]  %s1809_s17, 128, %s2243_s11, [#allocation4]  }
 0x488   :  { %1973 = dma.done.wait [#allocation4], 128  }
 0x489   :  { %1974 = vsyncadd [#allocation4], 4294967168 }
 0x48a   :  { %1815 = vsyncpa [#allocation3], 1 }
 0x48b   :  { %1816 = vsyncpa [#allocation6], 1 }
 0x48c   :  { %1817 = vsyncpa [#allocation9], 1 }
 0x48d   :  { %1818 = vsyncpa [#allocation4], 1 }

</bundles_post_ra>
